<compile_context>
chip_gen: v7x
topology: tpu7x:2x2x1
jax: 0.10.0
libtpu: 0.0.40
codegen_flags: <defaults>
</compile_context>

<pallas_src>
import jax
import jax.numpy as jnp
from jax.experimental import pallas as pl
from jax.experimental.pallas import tpu as pltpu

NUM_CLASSES = 7
W_IN = 16                  # time axis: 16 -> 8 -> 4 -> 2 across the three pools
BATCH = 2
C1, C2, C3 = 32, 64, 128   # conv channel counts
FC1, FC2 = 128, 64
LANE = 128                 # lane-dense padded width used everywhere in-kernel
TILE_N = 8                 # samples per grid step (NW_tile = 128 rows)

# Row offsets of the weight pieces inside the single lane-dense slab.  Every
# piece is 128 lanes wide and starts at a multiple of 128 rows, so every
# in-kernel slice is tile-aligned for both f32 and bf16.
O_W2, R_W2 = 0, 3 * LANE            # conv2: tap k at rows k*128+[0:C1], lanes [0:C2]
O_W3, R_W3 = O_W2 + R_W2, 3 * LANE  # conv3: tap k at rows k*128+[0:C2], lanes [0:C3]
O_FC1, R_FC1 = O_W3 + R_W3, 2 * C3  # fc1 : row w*128 + c  (torch flat index c*2+w)
O_FC2, R_FC2 = O_FC1 + R_FC1, FC1   # fc2 : lanes [0:FC2]
O_FC3, R_FC3 = O_FC2 + R_FC2, LANE  # fc3 : rows [0:FC2], lanes [0:NUM_CLASSES]
SLAB_ROWS = O_FC3 + R_FC3           # 1280


# --------------------------------- kernel -----------------------------------
def emotion_kernel(x_ref, pack_ref, slab_ref, out_ref, act_ref):
    nw = x_ref.shape[0]            # TILE_N * W_IN rows, row r = n*W_IN + w
    n = out_ref.shape[0]           # TILE_N samples in this tile
    cdt = slab_ref.dtype           # MXU operand dtype (bf16 in production)

    # Width position of every row, computed once (a handful of VALU ops).
    pos = jax.lax.broadcasted_iota(jnp.int32, (nw, 1), 0) % W_IN

    # Invariant (do not change W_IN / kernel width / pool factor without
    # revisiting): wrap-around pltpu.roll never leaks data across samples
    # because (a) conv neighbours that would cross a sample boundary are masked
    # to zero below, and (b) every row surviving pool level L (pos % 2**L == 0)
    # has its pool partner at pos + 2**(L-1) <= W_IN - 1, i.e. in-sample.
    def shift_up(a, d):            # a[r-d], zeroed where pos < d (left conv pad)
        return pltpu.roll(a, d, axis=0) * (pos >= d).astype(jnp.float32)

    def shift_dn(a, d):            # a[r+d], zeroed where pos >= W_IN-d (right pad)
        return pltpu.roll(a, nw - d, axis=0) * (pos < W_IN - d).astype(jnp.float32)

    def pool2(a, d):               # MaxPool(1,2): survivors at pos % (2d) == 0
        return jnp.maximum(a, pltpu.roll(a, nw - d, axis=0))   # max(a[r], a[r+d])

    # ---- block 1: conv(1->32); Cin=1 -> broadcast multiplies on the VPU (f32) ----
    x = x_ref[...]                                           # (nw, 1)
    a = (shift_up(x * pack_ref[0:1, :], 1)                   # x[r-1] * w'[k=0]
         + x * pack_ref[1:2, :]
         + shift_dn(x * pack_ref[2:3, :], 1)
         + pack_ref[3:4, :])                                 # folded bias + BN shift
    a = pool2(jnp.maximum(a, 0.0), 1)                        # live rows: pos % 2 == 0

    # ---- blocks 2 & 3: 3-tap conv fused into ONE wide-K matmul (BN folded) ----
    def conv_block(a, w, t, d):
        a_cat = jnp.concatenate([shift_up(a, d), a, shift_dn(a, d)], axis=1)
        c = jnp.dot(a_cat.astype(cdt), w, preferred_element_type=jnp.float32) + t
        return pool2(jnp.maximum(c, 0.0), d)

    a = conv_block(a, slab_ref[O_W2:O_W2 + R_W2, :], pack_ref[4:5, :], 2)  # pos%4==0
    a = conv_block(a, slab_ref[O_W3:O_W3 + R_W3, :], pack_ref[5:6, :], 4)  # pos%8==0
    # TODO(synk): at large TILE_N, also compact pos%4==0 rows before block 3 to
    # cut its M by 4x (not worth the gather cost at small tiles).

    # ---- compact BEFORE the FC tail (no selection matmul): per sample the two
    # flattened positions sit at rows n*16 + 0 and n*16 + 8 of the scratch. ----
    act_ref[...] = a
    a0 = act_ref[pl.ds(0, n, stride=W_IN), :]                # flat index c*2 + 0
    a1 = act_ref[pl.ds(8, n, stride=W_IN), :]                # flat index c*2 + 1
    flat = jnp.concatenate([a0, a1], axis=1)                 # (n, 256)

    # ---- FC tail on n rows; K=256 fills the 256-deep MXU on v6e/v7x ----
    h = jnp.maximum(
        jnp.dot(flat.astype(cdt), slab_ref[O_FC1:O_FC1 + R_FC1, :],
                preferred_element_type=jnp.float32) + pack_ref[6:7, :], 0.0)
    # TODO(synk): Dropout(0.5) is stochastic in train mode; identity here (eval).
    h = jnp.maximum(
        jnp.dot(h.astype(cdt), slab_ref[O_FC2:O_FC2 + R_FC2, :],
                preferred_element_type=jnp.float32) + pack_ref[7:8, :], 0.0)
    out_ref[...] = (
        jnp.dot(h.astype(cdt), slab_ref[O_FC3:O_FC3 + R_FC3, :],
                preferred_element_type=jnp.float32) + pack_ref[8:9, :])


# --------------------------------- wrapper -----------------------------------
@jax.jit
def emotion_recognizer(x, packed):
    """x: (N, 1, W_IN) f32 — what the PyTorch forward receives before unsqueeze(1)."""
    n = x.shape[0]
    n_pad = ((n + TILE_N - 1) // TILE_N) * TILE_N
    # Dilated row layout r = n*W_IN + w (width on sublanes).
    # TODO(synk): ship x as (N, W_IN) lane-rows and relayout in-kernel once the
    # input DMA is non-trivial (currently 1 live lane/row, but only 8 KiB/tile).
    xw = jnp.pad(x.reshape(n, W_IN), ((0, n_pad - n), (0, 0)))
    x_col = xw.reshape(n_pad * W_IN, 1)

    out = pl.pallas_call(
        emotion_kernel,
        out_shape=jax.ShapeDtypeStruct((n_pad, LANE), jnp.float32),
        grid=(n_pad // TILE_N,),
        in_specs=[
            pl.BlockSpec((TILE_N * W_IN, 1), lambda i: (i, 0)),   # activations tile
            pl.BlockSpec((16, LANE), lambda i: (0, 0)),           # small f32 pack
            pl.BlockSpec((SLAB_ROWS, LANE), lambda i: (0, 0)),    # weight slab
        ],
        out_specs=pl.BlockSpec((TILE_N, LANE), lambda i: (i, 0)),
        scratch_shapes=[pltpu.VMEM((TILE_N * W_IN, C3), jnp.float32)],
        compiler_params=pltpu.CompilerParams(
            dimension_semantics=("parallel",),   # shards tiles over v7x's 2 TCs
            vmem_limit_bytes=32 * 1024 * 1024,   # explicit; v5e default is 16 MiB
        ),
    )(x_col, packed['pack'], packed['slab'])
    return out[:n, :NUM_CLASSES]


# --------------------------- raw (torch-like) params --------------------------
def init_params(key):
    ks = jax.random.split(key, 24)

    def dense(k, shape, fan_in):
        return jax.random.normal(k, shape, jnp.float32) / jnp.sqrt(float(fan_in))

    def bn(kg, kb, km, kv, c):
        return (1.0 + 0.1 * jax.random.normal(kg, (1, c), jnp.float32),    # gamma
                0.1 * jax.random.normal(kb, (1, c), jnp.float32),          # beta
                0.1 * jax.random.normal(km, (1, c), jnp.float32),          # running mean
                1.0 + 0.1 * jax.random.uniform(kv, (1, c), jnp.float32))   # running var

    p = {}
    # conv weights stored as (k, Cin, Cout): w[k, ci, co] == torch.convX.weight[co, ci, 0, k]
    p['w1'] = dense(ks[0], (3, 1, C1), 3 * 1)
    p['b1'] = dense(ks[1], (1, C1), 3 * 1)
    p['g1'], p['be1'], p['m1'], p['v1'] = bn(ks[2], ks[3], ks[4], ks[5], C1)
    p['w2'] = dense(ks[6], (3, C1, C2), 3 * C1)
    p['b2'] = dense(ks[7], (1, C2), 3 * C1)
    p['g2'], p['be2'], p['m2'], p['v2'] = bn(ks[8], ks[9], ks[10], ks[11], C2)
    p['w3'] = dense(ks[12], (3, C2, C3), 3 * C2)
    p['b3'] = dense(ks[13], (1, C3), 3 * C2)
    p['g3'], p['be3'], p['m3'], p['v3'] = bn(ks[14], ks[15], ks[16], ks[17], C3)
    # fc1 stored as (w_position, C3, FC1): fc1w[w, c, o] == torch.fc1.weight[o, c*2 + w]
    p['fc1w'] = dense(ks[18], (2, C3, FC1), 2 * C3)
    p['fc1b'] = dense(ks[19], (1, FC1), 2 * C3)
    p['fc2w'] = dense(ks[20], (FC1, FC2), FC1)
    p['fc2b'] = dense(ks[21], (1, FC2), FC1)
    p['fc3w'] = dense(ks[22], (FC2, NUM_CLASSES), FC2)
    p['fc3b'] = dense(ks[23], (1, NUM_CLASSES), FC2)
    return p


# ------------------ host-side folding / packing for the kernel ----------------
def pack_params(p, weight_dtype=jnp.bfloat16):
    """Fold eval-mode BN + conv bias into the conv weights and pack everything
    the kernel needs into two tensors:
      'pack': (16, 128) f32  — folded conv1 taps (rows 0-2), bias/BN-shift rows
              (3-5), fc biases (6-8); every row zero-padded to 128 lanes.
      'slab': (1280, 128) weight_dtype — conv2 | conv3 | fc1 | fc2 | fc3, each
              piece 128 lanes wide and 128-row aligned (dead lanes/rows are 0).
    """
    def fold(g, beta, mean, var):
        s = g * jax.lax.rsqrt(var + 1e-5)
        return s, beta - mean * s

    s1, t1 = fold(p['g1'], p['be1'], p['m1'], p['v1'])
    s2, t2 = fold(p['g2'], p['be2'], p['m2'], p['v2'])
    s3, t3 = fold(p['g3'], p['be3'], p['m3'], p['v3'])

    w1f = (p['w1'] * s1[None]).reshape(3, C1)   # BN scale folded over Cout
    w2f = p['w2'] * s2[None]                    # (3, 32, 64)
    w3f = p['w3'] * s3[None]                    # (3, 64, 128)
    t1f = p['b1'] * s1 + t1                     # folded conv bias + BN shift
    t2f = p['b2'] * s2 + t2
    t3f = p['b3'] * s3 + t3

    pack = jnp.zeros((16, LANE), jnp.float32)
    pack = pack.at[0:3, :C1].set(w1f)
    pack = pack.at[3, :C1].set(t1f[0])
    pack = pack.at[4, :C2].set(t2f[0])
    pack = pack.at[5, :C3].set(t3f[0])
    pack = pack.at[6, :FC1].set(p['fc1b'][0])
    pack = pack.at[7, :FC2].set(p['fc2b'][0])
    pack = pack.at[8, :NUM_CLASSES].set(p['fc3b'][0])

    slab = jnp.zeros((SLAB_ROWS, LANE), jnp.float32)
    for k in range(3):
        slab = slab.at[O_W2 + k * LANE:O_W2 + k * LANE + C1, :C2].set(w2f[k])
        slab = slab.at[O_W3 + k * LANE:O_W3 + k * LANE + C2, :C3].set(w3f[k])
    slab = slab.at[O_FC1:O_FC1 + 2 * C3, :FC1].set(p['fc1w'].reshape(2 * C3, FC1))
    slab = slab.at[O_FC2:O_FC2 + FC1, :FC2].set(p['fc2w'])
    slab = slab.at[O_FC3:O_FC3 + FC2, :NUM_CLASSES].set(p['fc3w'])
    return {'pack': pack, 'slab': slab.astype(weight_dtype)}


# ------------------------- plain-JAX (NCHW) reference -------------------------
def reference_forward(x, p):
    h = x[:, None, :, :]                           # unsqueeze(1) -> (N, 1, 1, 16) NCHW
    hp = jax.lax.Precision.HIGHEST

    def block(h, w, b, g, beta, mean, var):
        w_oihw = jnp.transpose(w, (2, 1, 0))[:, :, None, :]      # (Cout, Cin, 1, 3)
        h = jax.lax.conv_general_dilated(
            h, w_oihw, window_strides=(1, 1), padding=((0, 0), (1, 1)),
            dimension_numbers=('NCHW', 'OIHW', 'NCHW'), precision=hp)
        h = h + b.reshape(1, -1, 1, 1)
        s = g * jax.lax.rsqrt(var + 1e-5)          # eval-mode BatchNorm
        t = beta - mean * s
        h = h * s.reshape(1, -1, 1, 1) + t.reshape(1, -1, 1, 1)
        h = jnp.maximum(h, 0.0)
        nb, c, hh, ww = h.shape
        return jnp.max(h.reshape(nb, c, hh, ww // 2, 2), axis=-1)   # MaxPool(1,2)

    h = block(h, p['w1'], p['b1'], p['g1'], p['be1'], p['m1'], p['v1'])
    h = block(h, p['w2'], p['b2'], p['g2'], p['be2'], p['m2'], p['v2'])
    h = block(h, p['w3'], p['b3'], p['g3'], p['be3'], p['m3'], p['v3'])
    flat = h.reshape(h.shape[0], -1)               # (N, 256), index c*2 + w
    w1fc = jnp.transpose(p['fc1w'], (1, 0, 2)).reshape(2 * C3, FC1)
    h = jnp.maximum(jnp.dot(flat, w1fc, precision=hp) + p['fc1b'], 0.0)
    h = jnp.maximum(jnp.dot(h, p['fc2w'], precision=hp) + p['fc2b'], 0.0)
    return jnp.dot(h, p['fc3w'], precision=hp) + p['fc3b']


if __name__ == "__main__":
    key = jax.random.PRNGKey(0)
    kx, kp = jax.random.split(key)
    x = jax.random.normal(kx, (BATCH, 1, W_IN), jnp.float32)
    params = init_params(kp)
    ref = reference_forward(x, params)

    # f32-weight variant: this is the logic check (tolerance is bounded by the
    # MXU's default precision for f32 operands, not by the kernel structure).
    out32 = jax.block_until_ready(
        emotion_recognizer(x, pack_params(params, jnp.float32)))
    assert out32.shape == (BATCH, NUM_CLASSES) and out32.dtype == jnp.float32
    err32 = float(jnp.max(jnp.abs(out32 - ref)))
    assert err32 < 1e-2, f"f32 kernel vs reference: max abs err = {err32}"

    # bf16-weight variant (production path): adds only bf16 quantization noise
    # of the matmul operands on top of the f32-checked logic.
    outbf = jax.block_until_ready(
        emotion_recognizer(x, pack_params(params, jnp.bfloat16)))
    errbf = float(jnp.max(jnp.abs(outbf - ref)))
    assert errbf < 1e-1, f"bf16 kernel vs reference: max abs err = {errbf}"

    print("KERNEL_OK")
</pallas_src>

<mosaic_0001>
module attributes {stable_mosaic.version = 11 : i64} {
  func.func @emotion_kernel(%arg0: i32, %arg1: memref<128x1xf32, #tpu.memory_space<vmem>>, %arg2: memref<16x128xf32, #tpu.memory_space<vmem>>, %arg3: memref<1280x128xf32, #tpu.memory_space<vmem>>, %arg4: memref<8x128xf32, #tpu.memory_space<vmem>>, %arg5: memref<128x128xf32, #tpu.memory_space<vmem>>) attributes {dimension_semantics = [#tpu.dimension_semantics<parallel>], iteration_bounds = array<i64: 1>, scalar_prefetch = 0 : i64, scratch_operands = 1 : i64, tpu.core_type = #tpu.core_type<tc>, window_params = [{transform_indices = @transform_0, window_bounds = array<i64: 128, 1>}, {pipeline_mode = #tpu.pipeline_mode<synchronous>, transform_indices = @transform_1, window_bounds = array<i64: 16, 128>}, {pipeline_mode = #tpu.pipeline_mode<synchronous>, transform_indices = @transform_2, window_bounds = array<i64: 1280, 128>}, {transform_indices = @transform_3, window_bounds = array<i64: 8, 128>}]} {
    %0 = tpu.iota {dimensions = array<i32: 0>} : vector<128x1xi32>
    %c16_i32 = arith.constant 16 : i32
    %c0_i32 = arith.constant 0 : i32
    %1 = arith.cmpi eq, %c16_i32, %c0_i32 : i32
    %c1_i32 = arith.constant 1 : i32
    %2 = arith.select %1, %c1_i32, %c16_i32 : i32
    %3 = vector.broadcast %2 : i32 to vector<128x1xi32>
    %4 = arith.remsi %0, %3 : vector<128x1xi32>
    %c0_i32_0 = arith.constant 0 : i32
    %5 = vector.broadcast %c0_i32_0 : i32 to vector<128x1xi32>
    %6 = arith.cmpi ne, %4, %5 : vector<128x1xi32>
    %c0_i32_1 = arith.constant 0 : i32
    %7 = vector.broadcast %c0_i32_1 : i32 to vector<128x1xi32>
    %8 = arith.cmpi slt, %4, %7 : vector<128x1xi32>
    %c0_i32_2 = arith.constant 0 : i32
    %9 = arith.cmpi slt, %2, %c0_i32_2 : i32
    %10 = vector.broadcast %9 : i1 to vector<128x1xi1>
    %11 = vector.broadcast %10 : vector<128x1xi1> to vector<128x1xi1>
    %12 = arith.xori %8, %11 : vector<128x1xi1>
    %13 = arith.andi %12, %6 : vector<128x1xi1>
    %14 = vector.broadcast %2 : i32 to vector<128x1xi32>
    %15 = arith.addi %4, %14 : vector<128x1xi32>
    %16 = arith.select %13, %15, %4 : vector<128x1xi1>, vector<128x1xi32>
    %c0 = arith.constant 0 : index
    %c0_3 = arith.constant 0 : index
    %17 = vector.load %arg1[%c0, %c0_3] : memref<128x1xf32, #tpu.memory_space<vmem>>, vector<128x1xf32>
    %c0_4 = arith.constant 0 : index
    %c0_5 = arith.constant 0 : index
    %18 = vector.load %arg2[%c0_4, %c0_5] : memref<16x128xf32, #tpu.memory_space<vmem>>, vector<1x128xf32>
    %19 = vector.broadcast %17 : vector<128x1xf32> to vector<128x128xf32>
    %20 = vector.broadcast %18 : vector<1x128xf32> to vector<128x128xf32>
    %21 = arith.mulf %19, %20 : vector<128x128xf32>
    %c1_i32_6 = arith.constant 1 : i32
    %22 = tpu.dynamic_rotate %21 by %c1_i32_6 dim 0 : vector<128x128xf32>, i32 -> vector<128x128xf32>
    %c1_i32_7 = arith.constant 1 : i32
    %23 = vector.broadcast %c1_i32_7 : i32 to vector<128x1xi32>
    %24 = arith.cmpi sge, %16, %23 : vector<128x1xi32>
    %25 = arith.extui %24 : vector<128x1xi1> to vector<128x1xi32>
    %26 = arith.sitofp %25 : vector<128x1xi32> to vector<128x1xf32>
    %27 = vector.broadcast %26 : vector<128x1xf32> to vector<128x128xf32>
    %28 = arith.mulf %22, %27 : vector<128x128xf32>
    %c1 = arith.constant 1 : index
    %c0_8 = arith.constant 0 : index
    %29 = vector.load %arg2[%c1, %c0_8] : memref<16x128xf32, #tpu.memory_space<vmem>>, vector<1x128xf32>
    %30 = vector.broadcast %17 : vector<128x1xf32> to vector<128x128xf32>
    %31 = vector.broadcast %29 : vector<1x128xf32> to vector<128x128xf32>
    %32 = arith.mulf %30, %31 : vector<128x128xf32>
    %33 = arith.addf %28, %32 : vector<128x128xf32>
    %c2 = arith.constant 2 : index
    %c0_9 = arith.constant 0 : index
    %34 = vector.load %arg2[%c2, %c0_9] : memref<16x128xf32, #tpu.memory_space<vmem>>, vector<1x128xf32>
    %35 = vector.broadcast %17 : vector<128x1xf32> to vector<128x128xf32>
    %36 = vector.broadcast %34 : vector<1x128xf32> to vector<128x128xf32>
    %37 = arith.mulf %35, %36 : vector<128x128xf32>
    %c127_i32 = arith.constant 127 : i32
    %38 = tpu.dynamic_rotate %37 by %c127_i32 dim 0 : vector<128x128xf32>, i32 -> vector<128x128xf32>
    %c15_i32 = arith.constant 15 : i32
    %39 = vector.broadcast %c15_i32 : i32 to vector<128x1xi32>
    %40 = arith.cmpi slt, %16, %39 : vector<128x1xi32>
    %41 = arith.extui %40 : vector<128x1xi1> to vector<128x1xi32>
    %42 = arith.sitofp %41 : vector<128x1xi32> to vector<128x1xf32>
    %43 = vector.broadcast %42 : vector<128x1xf32> to vector<128x128xf32>
    %44 = arith.mulf %38, %43 : vector<128x128xf32>
    %45 = arith.addf %33, %44 : vector<128x128xf32>
    %c3 = arith.constant 3 : index
    %c0_10 = arith.constant 0 : index
    %46 = vector.load %arg2[%c3, %c0_10] : memref<16x128xf32, #tpu.memory_space<vmem>>, vector<1x128xf32>
    %47 = vector.broadcast %46 : vector<1x128xf32> to vector<128x128xf32>
    %48 = arith.addf %45, %47 : vector<128x128xf32>
    %cst = arith.constant 0.000000e+00 : f32
    %49 = vector.broadcast %cst : f32 to vector<128x128xf32>
    %50 = arith.maximumf %48, %49 : vector<128x128xf32>
    %c127_i32_11 = arith.constant 127 : i32
    %51 = tpu.dynamic_rotate %50 by %c127_i32_11 dim 0 : vector<128x128xf32>, i32 -> vector<128x128xf32>
    %52 = arith.maximumf %50, %51 : vector<128x128xf32>
    %c0_12 = arith.constant 0 : index
    %c0_13 = arith.constant 0 : index
    %53 = vector.load %arg3[%c0_12, %c0_13] : memref<1280x128xf32, #tpu.memory_space<vmem>>, vector<384x128xf32>
    %c4 = arith.constant 4 : index
    %c0_14 = arith.constant 0 : index
    %54 = vector.load %arg2[%c4, %c0_14] : memref<16x128xf32, #tpu.memory_space<vmem>>, vector<1x128xf32>
    %c2_i32 = arith.constant 2 : i32
    %55 = tpu.dynamic_rotate %52 by %c2_i32 dim 0 : vector<128x128xf32>, i32 -> vector<128x128xf32>
    %c2_i32_15 = arith.constant 2 : i32
    %56 = vector.broadcast %c2_i32_15 : i32 to vector<128x1xi32>
    %57 = arith.cmpi sge, %16, %56 : vector<128x1xi32>
    %58 = arith.extui %57 : vector<128x1xi1> to vector<128x1xi32>
    %59 = arith.sitofp %58 : vector<128x1xi32> to vector<128x1xf32>
    %60 = vector.broadcast %59 : vector<128x1xf32> to vector<128x128xf32>
    %61 = arith.mulf %55, %60 : vector<128x128xf32>
    %c126_i32 = arith.constant 126 : i32
    %62 = tpu.dynamic_rotate %52 by %c126_i32 dim 0 : vector<128x128xf32>, i32 -> vector<128x128xf32>
    %c14_i32 = arith.constant 14 : i32
    %63 = vector.broadcast %c14_i32 : i32 to vector<128x1xi32>
    %64 = arith.cmpi slt, %16, %63 : vector<128x1xi32>
    %65 = arith.extui %64 : vector<128x1xi1> to vector<128x1xi32>
    %66 = arith.sitofp %65 : vector<128x1xi32> to vector<128x1xf32>
    %67 = vector.broadcast %66 : vector<128x1xf32> to vector<128x128xf32>
    %68 = arith.mulf %62, %67 : vector<128x128xf32>
    %69 = tpu.concatenate %61, %52, %68 in 1 : vector<128x128xf32>, vector<128x128xf32>, vector<128x128xf32> -> vector<128x384xf32>
    %cst_16 = arith.constant dense<0.000000e+00> : vector<128x128xf32>
    %70 = tpu.matmul %69, %53, %cst_16 {dimension_numbers = #tpu.dot_dimension_numbers<[1], [0], [0], [1], [0, 0, 1, 1], [], []>} : vector<128x384xf32>, vector<384x128xf32>, vector<128x128xf32> -> vector<128x128xf32>
    %71 = vector.broadcast %54 : vector<1x128xf32> to vector<128x128xf32>
    %72 = arith.addf %70, %71 : vector<128x128xf32>
    %cst_17 = arith.constant 0.000000e+00 : f32
    %73 = vector.broadcast %cst_17 : f32 to vector<128x128xf32>
    %74 = arith.maximumf %72, %73 : vector<128x128xf32>
    %c126_i32_18 = arith.constant 126 : i32
    %75 = tpu.dynamic_rotate %74 by %c126_i32_18 dim 0 : vector<128x128xf32>, i32 -> vector<128x128xf32>
    %76 = arith.maximumf %74, %75 : vector<128x128xf32>
    %c384 = arith.constant 384 : index
    %c0_19 = arith.constant 0 : index
    %77 = vector.load %arg3[%c384, %c0_19] : memref<1280x128xf32, #tpu.memory_space<vmem>>, vector<384x128xf32>
    %c5 = arith.constant 5 : index
    %c0_20 = arith.constant 0 : index
    %78 = vector.load %arg2[%c5, %c0_20] : memref<16x128xf32, #tpu.memory_space<vmem>>, vector<1x128xf32>
    %c4_i32 = arith.constant 4 : i32
    %79 = tpu.dynamic_rotate %76 by %c4_i32 dim 0 : vector<128x128xf32>, i32 -> vector<128x128xf32>
    %c4_i32_21 = arith.constant 4 : i32
    %80 = vector.broadcast %c4_i32_21 : i32 to vector<128x1xi32>
    %81 = arith.cmpi sge, %16, %80 : vector<128x1xi32>
    %82 = arith.extui %81 : vector<128x1xi1> to vector<128x1xi32>
    %83 = arith.sitofp %82 : vector<128x1xi32> to vector<128x1xf32>
    %84 = vector.broadcast %83 : vector<128x1xf32> to vector<128x128xf32>
    %85 = arith.mulf %79, %84 : vector<128x128xf32>
    %c124_i32 = arith.constant 124 : i32
    %86 = tpu.dynamic_rotate %76 by %c124_i32 dim 0 : vector<128x128xf32>, i32 -> vector<128x128xf32>
    %c12_i32 = arith.constant 12 : i32
    %87 = vector.broadcast %c12_i32 : i32 to vector<128x1xi32>
    %88 = arith.cmpi slt, %16, %87 : vector<128x1xi32>
    %89 = arith.extui %88 : vector<128x1xi1> to vector<128x1xi32>
    %90 = arith.sitofp %89 : vector<128x1xi32> to vector<128x1xf32>
    %91 = vector.broadcast %90 : vector<128x1xf32> to vector<128x128xf32>
    %92 = arith.mulf %86, %91 : vector<128x128xf32>
    %93 = tpu.concatenate %85, %76, %92 in 1 : vector<128x128xf32>, vector<128x128xf32>, vector<128x128xf32> -> vector<128x384xf32>
    %cst_22 = arith.constant dense<0.000000e+00> : vector<128x128xf32>
    %94 = tpu.matmul %93, %77, %cst_22 {dimension_numbers = #tpu.dot_dimension_numbers<[1], [0], [0], [1], [0, 0, 1, 1], [], []>} : vector<128x384xf32>, vector<384x128xf32>, vector<128x128xf32> -> vector<128x128xf32>
    %95 = vector.broadcast %78 : vector<1x128xf32> to vector<128x128xf32>
    %96 = arith.addf %94, %95 : vector<128x128xf32>
    %cst_23 = arith.constant 0.000000e+00 : f32
    %97 = vector.broadcast %cst_23 : f32 to vector<128x128xf32>
    %98 = arith.maximumf %96, %97 : vector<128x128xf32>
    %c124_i32_24 = arith.constant 124 : i32
    %99 = tpu.dynamic_rotate %98 by %c124_i32_24 dim 0 : vector<128x128xf32>, i32 -> vector<128x128xf32>
    %100 = arith.maximumf %98, %99 : vector<128x128xf32>
    %c0_25 = arith.constant 0 : index
    %c0_26 = arith.constant 0 : index
    %101 = vector.load %arg5[%c0_25, %c0_26] : memref<128x128xf32, #tpu.memory_space<vmem>>, vector<128x128xf32>
    tpu.vector_store %arg5[%c0_25, %c0_26], %100 {strides = array<i32>} : memref<128x128xf32, #tpu.memory_space<vmem>>, vector<128x128xf32>,
    %c0_27 = arith.constant 0 : index
    %c0_28 = arith.constant 0 : index
    %102 = tpu.strided_load %arg5[%c0_27, %c0_28] {strides = array<i32: 16, 1>} : memref<128x128xf32, #tpu.memory_space<vmem>>, vector<8x128xf32>
    %c8 = arith.constant 8 : index
    %c0_29 = arith.constant 0 : index
    %103 = tpu.strided_load %arg5[%c8, %c0_29] {strides = array<i32: 16, 1>} : memref<128x128xf32, #tpu.memory_space<vmem>>, vector<8x128xf32>
    %104 = tpu.concatenate %102, %103 in 1 : vector<8x128xf32>, vector<8x128xf32> -> vector<8x256xf32>
    %c768 = arith.constant 768 : index
    %c0_30 = arith.constant 0 : index
    %105 = vector.load %arg3[%c768, %c0_30] : memref<1280x128xf32, #tpu.memory_space<vmem>>, vector<256x128xf32>
    %cst_31 = arith.constant dense<0.000000e+00> : vector<8x128xf32>
    %106 = tpu.matmul %104, %105, %cst_31 {dimension_numbers = #tpu.dot_dimension_numbers<[1], [0], [0], [1], [0, 0, 1, 1], [], []>} : vector<8x256xf32>, vector<256x128xf32>, vector<8x128xf32> -> vector<8x128xf32>
    %c6 = arith.constant 6 : index
    %c0_32 = arith.constant 0 : index
    %107 = vector.load %arg2[%c6, %c0_32] : memref<16x128xf32, #tpu.memory_space<vmem>>, vector<1x128xf32>
    %108 = vector.broadcast %107 : vector<1x128xf32> to vector<8x128xf32>
    %109 = arith.addf %106, %108 : vector<8x128xf32>
    %cst_33 = arith.constant 0.000000e+00 : f32
    %110 = vector.broadcast %cst_33 : f32 to vector<8x128xf32>
    %111 = arith.maximumf %109, %110 : vector<8x128xf32>
    %c1024 = arith.constant 1024 : index
    %c0_34 = arith.constant 0 : index
    %112 = vector.load %arg3[%c1024, %c0_34] : memref<1280x128xf32, #tpu.memory_space<vmem>>, vector<128x128xf32>
    %cst_35 = arith.constant dense<0.000000e+00> : vector<8x128xf32>
    %113 = tpu.matmul %111, %112, %cst_35 {dimension_numbers = #tpu.dot_dimension_numbers<[1], [0], [0], [1], [0, 0, 1, 1], [], []>} : vector<8x128xf32>, vector<128x128xf32>, vector<8x128xf32> -> vector<8x128xf32>
    %c7 = arith.constant 7 : index
    %c0_36 = arith.constant 0 : index
    %114 = vector.load %arg2[%c7, %c0_36] : memref<16x128xf32, #tpu.memory_space<vmem>>, vector<1x128xf32>
    %115 = vector.broadcast %114 : vector<1x128xf32> to vector<8x128xf32>
    %116 = arith.addf %113, %115 : vector<8x128xf32>
    %cst_37 = arith.constant 0.000000e+00 : f32
    %117 = vector.broadcast %cst_37 : f32 to vector<8x128xf32>
    %118 = arith.maximumf %116, %117 : vector<8x128xf32>
    %c1152 = arith.constant 1152 : index
    %c0_38 = arith.constant 0 : index
    %119 = vector.load %arg3[%c1152, %c0_38] : memref<1280x128xf32, #tpu.memory_space<vmem>>, vector<128x128xf32>
    %cst_39 = arith.constant dense<0.000000e+00> : vector<8x128xf32>
    %120 = tpu.matmul %118, %119, %cst_39 {dimension_numbers = #tpu.dot_dimension_numbers<[1], [0], [0], [1], [0, 0, 1, 1], [], []>} : vector<8x128xf32>, vector<128x128xf32>, vector<8x128xf32> -> vector<8x128xf32>
    %c8_40 = arith.constant 8 : index
    %c0_41 = arith.constant 0 : index
    %121 = vector.load %arg2[%c8_40, %c0_41] : memref<16x128xf32, #tpu.memory_space<vmem>>, vector<1x128xf32>
    %122 = vector.broadcast %121 : vector<1x128xf32> to vector<8x128xf32>
    %123 = arith.addf %120, %122 : vector<8x128xf32>
    %c0_42 = arith.constant 0 : index
    %c0_43 = arith.constant 0 : index
    %124 = vector.load %arg4[%c0_42, %c0_43] : memref<8x128xf32, #tpu.memory_space<vmem>>, vector<8x128xf32>
    tpu.vector_store %arg4[%c0_42, %c0_43], %123 {strides = array<i32>} : memref<8x128xf32, #tpu.memory_space<vmem>>, vector<8x128xf32>,
    return
  }
  func.func @transform_0(%arg0: i32) -> (i32, i32) {
    %c0_i32 = arith.constant 0 : i32
    %c0_i32_0 = arith.constant 0 : i32
    return %arg0, %c0_i32 : i32, i32
  }
  func.func @transform_1(%arg0: i32) -> (i32, i32) {
    %c0_i32 = arith.constant 0 : i32
    %c0_i32_0 = arith.constant 0 : i32
    %c0_i32_1 = arith.constant 0 : i32
    return %c0_i32, %c0_i32_0 : i32, i32
  }
  func.func @transform_2(%arg0: i32) -> (i32, i32) {
    %c0_i32 = arith.constant 0 : i32
    %c0_i32_0 = arith.constant 0 : i32
    %c0_i32_1 = arith.constant 0 : i32
    return %c0_i32, %c0_i32_0 : i32, i32
  }
  func.func @transform_3(%arg0: i32) -> (i32, i32) {
    %c0_i32 = arith.constant 0 : i32
    %c0_i32_0 = arith.constant 0 : i32
    return %arg0, %c0_i32 : i32, i32
  }
}

</mosaic_0001>

<bundles_post_ra>
// kernel: emotion_recognizer.1
= control target key start
LH: loop header
LB: loop body
LE: loop exit
PB: predicated region body
PF: predicated region fallthrough
CT: control target
= control target key end

     0   :  { %8 = vsyncpa [#allocation4], 0  ;;  %s2977_s12 = smov [#allocation3]   ;;  %s4169_s0 = inlined_call_operand.vmem [shape: f32[128,1], index: 0, kind: input, shape index: {}]   ;;  %s4170_s1 = inlined_call_operand.vmem [shape: f32[16,128], index: 1, kind: input, shape index: {}]   ;;  %s4171_s2 = inlined_call_operand.hbm [shape: f32[1280,128], index: 2, kind: input, shape index: {}]   ;;  %s4172_s3 = inlined_call_operand.vmem [shape: f32[8,128], index: 3, kind: output, shape index: {}]  }
   0x1   :  { %s18_s13 = sshll.u32 %s2977_s12, 4  ;;  %s2953_s16 = scalar_lea.hbm %s4171_s2, 20480  ;;  %s19_s13 = int_to_ptr.vmem [resolvable:$true] %s18_s13 }
   0x2   :  { %p2954_p0 = scmp.ne.s32.totalorder %s4171_s2, %s2953_s16  ;;  %p2957_p1 = scmp.lt.u32.totalorder %s2953_s16, %s4171_s2 }
   0x4   :  { %p2959_p2 = pnand %p2957_p1, %p2954_p0 }
   0x6   :  { %2962 = shalt.err (!%p2959_p2)
}
   0x7   :  { %s2963_s21 = scalar_lea.vmem %s19_s13, 20480  ;;  %p2968_p4 = scmp.lt.s32.totalorder %s19_s13, %s19_s13 }
   0x8   :  { %p2964_p3 = scmp.ne.s32.totalorder %s19_s13, %s2963_s21  ;;  %p2969_p5 = scmp.lt.s32.totalorder %s2963_s21, %s2963_s21 }
   0xa   :  { %p2970_p6 = por %p2969_p5, %p2968_p4 }
   0xc   :  { %p2971_p7 = pnand %p2970_p6, %p2964_p3 }
   0xe   :  { %2974 = shalt.err (!%p2971_p7)
}
   0xf   :  { %s2978_s22 = smov 128   ;;  %s2979_s23 = smov 8  }
  0x10   :  { %24 = dma.hbm_to_vmem [thread:$0]  %s4171_s2, 20480, %s19_s13, [#allocation4], %s2978_s22, %s2978_s22, %s2979_s23  }
  0x11   :  { %2975 = dma.done.wait [#allocation4], 20480  }
  0x12   :  { %2976 = vsyncadd [#allocation4], 4294946816  ;;  %v2980_v0 = vmov 0   ;;  %v238_v1 = vld [vmem:[%s4169_s0 + $0x8] sm:$0xff]  ;;  %v237_v2 = vld [vmem:[%s4169_s0] sm:$0xff] }
  0x13   :  { %2952 = vset.pattern.permute.xlu1 %v2980_v0  ;;  %2951 = vset.pattern.permute.xlu0 %v2980_v0  ;;  %v239_v3 = vld [vmem:[%s4169_s0 + $0x10] sm:$0xff]  ;;  %v252_v4 = vld [vmem:[%s4169_s0 + $0x78] sm:$0xff]  ;;  %v723_v5 = vld [vmem:[#allocation3 + $0x80] sm:$0xff] }
  0x14   :  { %261 = vperm.xlu1 %2952, %v238_v1   ;;  %256 = vperm.xlu0 %2951, %v237_v2   ;;  %v724_v6 = vld [vmem:[#allocation3 + $0x88] sm:$0xff]  ;;  %v240_v7 = vld [vmem:[%s4169_s0 + $0x18] sm:$0xff]  ;;  %v251_v8 = vld [vmem:[%s4169_s0 + $0x70] sm:$0xff] }
  0x15   :  { %v2736_v9 = vpack.c.bf16 %v724_v6, %v723_v5  ;;  %v707_v10 = vld [vmem:[#allocation3] sm:$0xff]  ;;  %v708_v11 = vld [vmem:[#allocation3 + $0x8] sm:$0xff]  ;;  %v725_v12 = vld [vmem:[#allocation3 + $0x90] sm:$0xff] }
  0x16   :  { %v242_v13 = vld [vmem:[%s4169_s0 + $0x28] sm:$0xff]  ;;  %v2738_v14 = vpack.c.bf16 %v708_v11, %v707_v10  ;;  %v726_v15 = vld [vmem:[#allocation3 + $0x98] sm:$0xff]  ;;  %v739_v16 = vld [vmem:[#allocation3 + $0x100] sm:$0xff] }
  0x17   :  { %2737 = vmatprep.subr.bf16.mxu0 %v2736_v9  ;;  %v740_v17 = vld [vmem:[#allocation3 + $0x108] sm:$0xff]  ;;  %v2740_v18 = vpack.c.bf16 %v726_v15, %v725_v12  ;;  %v709_v20 = vld [vmem:[#allocation3 + $0x10] sm:$0xff]  ;;  %v710_v21 = vld [vmem:[#allocation3 + $0x18] sm:$0xff] }
  0x18   :  { %266 = vperm.xlu1 %2952, %v239_v3   ;;  %331 = vperm.xlu0 %2951, %v252_v4   ;;  %v2768_v19 = vpack.c.bf16 %v740_v17, %v739_v16  ;;  %v727_v22 = vld [vmem:[#allocation3 + $0xa0] sm:$0xff]  ;;  %v728_v24 = vld [vmem:[#allocation3 + $0xa8] sm:$0xff]  ;;  %v741_v25 = vld [vmem:[#allocation3 + $0x110] sm:$0xff]  ;;  %v2742_v26 = vpack.c.bf16 %v710_v21, %v709_v20 }
  0x19   :  { %v241_v23 = vld [vmem:[%s4169_s0 + $0x20] sm:$0xff]  ;;  %2739 = vmatpush3.bf16.msra.mxu0 %v2738_v14  ;;  %v2744_v27 = vpack.c.bf16 %v728_v24, %v727_v22  ;;  %v742_v28 = vld [vmem:[#allocation3 + $0x118] sm:$0xff]  ;;  %v712_v30 = vld [vmem:[#allocation3 + $0x28] sm:$0xff] }
  0x1a   :  { %2741 = vmatprep.subr.bf16.mxu0 %v2740_v18  ;;  %2769 = vmatprep.subr.bf16.mxu1 %v2768_v19  ;;  %v711_v29 = vld [vmem:[#allocation3 + $0x20] sm:$0xff]  ;;  %v2772_v31 = vpack.c.bf16 %v742_v28, %v741_v25  ;;  %v729_v32 = vld [vmem:[#allocation3 + $0xb0] sm:$0xff]  ;;  %v730_v33 = vld [vmem:[#allocation3 + $0xb8] sm:$0xff]  ;;  %v28_v25 = vlaneseq }
  0x1b   :  { %2771 = vmatpush3.bf16.msra.mxu1 %v2768_v19  ;;  %v743_v34 = vld [vmem:[#allocation3 + $0x120] sm:$0xff]  ;;  %v244_v35 = vld [vmem:[%s4169_s0 + $0x38] sm:$0xff]  ;;  %v243_v36 = vld [vmem:[%s4169_s0 + $0x30] sm:$0xff]  ;;  %v2746_v37 = vpack.c.bf16 %v712_v30, %v711_v29  ;;  %v2748_v39 = vpack.c.bf16 %v730_v33, %v729_v32 }
  0x1c   :  { %271 = vperm.xlu1 %2952, %v240_v7   ;;  %326 = vperm.xlu0 %2951, %v251_v8   ;;  %v744_v38 = vld [vmem:[#allocation3 + $0x128] sm:$0xff]  ;;  %v713_v41 = vld [vmem:[#allocation3 + $0x30] sm:$0xff]  ;;  %v714_v42 = vld [vmem:[#allocation3 + $0x38] sm:$0xff] }
  0x1d   :  { %2743 = vmatpush3.bf16.msra.mxu0 %v2742_v26  ;;  %2773 = vmatprep.subr.bf16.mxu1 %v2772_v31  ;;  %v2776_v40 = vpack.c.bf16 %v744_v38, %v743_v34  ;;  %v246_v43 = vld [vmem:[%s4169_s0 + $0x48] sm:$0xff]  ;;  %v245_v44 = vld [vmem:[%s4169_s0 + $0x40] sm:$0xff]  ;;  %v2750_v45 = vpack.c.bf16 %v714_v42, %v713_v41  ;;  %v745_v48 = vld [vmem:[#allocation3 + $0x130] sm:$0xff]  ;;  %v3064_v26 = vshrl.u32 %v28_v25, 7 }
  0x1e   :  { %2745 = vmatprep.subr.bf16.mxu0 %v2744_v27  ;;  %v731_v46 = vld [vmem:[#allocation3 + $0xc0] sm:$0xff]  ;;  %v732_v47 = vld [vmem:[#allocation3 + $0xc8] sm:$0xff]  ;;  %v746_v50 = vld [vmem:[#allocation3 + $0x138] sm:$0xff] }
  0x1f   :  { %2775 = vmatpush3.bf16.msra.mxu1 %v2772_v31  ;;  %v2752_v49 = vpack.c.bf16 %v732_v47, %v731_v46  ;;  %v2780_v51 = vpack.c.bf16 %v746_v50, %v745_v48  ;;  %v715_v52 = vld [vmem:[#allocation3 + $0x40] sm:$0xff]  ;;  %v716_v53 = vld [vmem:[#allocation3 + $0x48] sm:$0xff]  ;;  %v248_v54 = vld [vmem:[%s4169_s0 + $0x58] sm:$0xff]  ;;  %v30_v27 = vadd.s32 8, %v3064_v26  ;;  %v31_v28 = vadd.s32 16, %v3064_v26 }
  0x20   :  { %281 = vperm.xlu1 %2952, %v242_v13   ;;  %276 = vperm.xlu0 %2951, %v241_v23   ;;  %v247_v55 = vld [vmem:[%s4169_s0 + $0x50] sm:$0xff]  ;;  %v2754_v56 = vpack.c.bf16 %v716_v53, %v715_v52  ;;  %v734_v58 = vld [vmem:[#allocation3 + $0xd8] sm:$0xff]  ;;  %v747_v59 = vld [vmem:[#allocation3 + $0x140] sm:$0xff]  ;;  %v44_v29 = vadd.s32 120, %v3064_v26  ;;  %v3074_v32 = vand.u32 15, %v3064_v26  ;;  %v32_v34 = vadd.s32 24, %v3064_v26 }
  0x21   :  { %2747 = vmatpush3.bf16.msra.mxu0 %v2746_v37  ;;  %2777 = vmatprep.subr.bf16.mxu1 %v2776_v40  ;;  %v733_v57 = vld [vmem:[#allocation3 + $0xd0] sm:$0xff]  ;;  %v748_v61 = vld [vmem:[#allocation3 + $0x148] sm:$0xff]  ;;  %v249_v63 = vld [vmem:[%s4169_s0 + $0x60] sm:$0xff]  ;;  %v3069_v30 = vand.u32 15, %v30_v27  ;;  %v3071_v31 = vand.u32 15, %v31_v28  ;;  %v35_v37 = vadd.s32 48, %v3064_v26 }
  0x22   :  { %2749 = vmatprep.subr.bf16.mxu0 %v2748_v39  ;;  %v2756_v60 = vpack.c.bf16 %v734_v58, %v733_v57  ;;  %v250_v62 = vld [vmem:[%s4169_s0 + $0x68] sm:$0xff]  ;;  %v2784_v0 = vpack.c.bf16 %v748_v61, %v747_v59  ;;  %v717_v1 = vld [vmem:[#allocation3 + $0x50] sm:$0xff]  ;;  %v718_v2 = vld [vmem:[#allocation3 + $0x58] sm:$0xff]  ;;  %4202 = vst [vmem:[#allocation8_spill] sm:$0xff] %v3074_v32  ;;  %v3076_v33 = vand.u32 15, %v44_v29  ;;  %v37_v38 = vadd.s32 64, %v3064_v26 }
  0x23   :  { %2779 = vmatpush3.bf16.msra.mxu1 %v2776_v40  ;;  %v2758_v3 = vpack.c.bf16 %v718_v2, %v717_v1  ;;  %v735_v4 = vld [vmem:[#allocation3 + $0xe0] sm:$0xff]  ;;  %v736_v5 = vld [vmem:[#allocation3 + $0xe8] sm:$0xff]  ;;  %v749_v6 = vld [vmem:[#allocation3 + $0x150] sm:$0xff]  ;;  %4200 = vst [vmem:[#allocation6_spill] sm:$0xff] %v3069_v30  ;;  %v36_v39 = vadd.s32 56, %v3064_v26  ;;  %v38_v40 = vadd.s32 72, %v3064_v26 }
  0x24   :  { %291 = vperm.xlu1 %2952, %v244_v35   ;;  %286 = vperm.xlu0 %2951, %v243_v36   ;;  %v2760_v7 = vpack.c.bf16 %v736_v5, %v735_v4  ;;  %v750_v8 = vld [vmem:[#allocation3 + $0x158] sm:$0xff]  ;;  %v719_v10 = vld [vmem:[#allocation3 + $0x60] sm:$0xff]  ;;  %v720_v11 = vld [vmem:[#allocation3 + $0x68] sm:$0xff]  ;;  %4201 = vst [vmem:[#allocation7_spill] sm:$0xff] %v3071_v31  ;;  %v33_v35 = vadd.s32 32, %v3064_v26  ;;  %v34_v36 = vadd.s32 40, %v3064_v26 }
  0x25   :  { %2751 = vmatpush3.bf16.msra.mxu0 %v2750_v45  ;;  %2781 = vmatprep.subr.bf16.mxu1 %v2780_v51  ;;  %v2788_v9 = vpack.c.bf16 %v750_v8, %v749_v6  ;;  %v2762_v12 = vpack.c.bf16 %v720_v11, %v719_v10  ;;  %v737_v13 = vld [vmem:[#allocation3 + $0xf0] sm:$0xff]  ;;  %v738_v14 = vld [vmem:[#allocation3 + $0xf8] sm:$0xff]  ;;  %v751_v15 = vld [vmem:[#allocation3 + $0x160] sm:$0xff]  ;;  %4203 = vst [vmem:[#allocation9_spill] sm:$0xff] %v3076_v33  ;;  %v39_v41 = vadd.s32 80, %v3064_v26  ;;  %vm389_vm0 = vcmp.ge.s32.totalorder %v3071_v31, 1 }
  0x26   :  { %2753 = vmatprep.subr.bf16.mxu0 %v2752_v49  ;;  %v2764_v16 = vpack.c.bf16 %v738_v14, %v737_v13  ;;  %v752_v17 = vld [vmem:[#allocation3 + $0x168] sm:$0xff]  ;;  %v721_v18 = vld [vmem:[#allocation3 + $0x70] sm:$0xff]  ;;  %v722_v19 = vld [vmem:[#allocation3 + $0x78] sm:$0xff]  ;;  %vm543_vm1 = vcmp.lt.s32.totalorder %v3069_v30, 15  ;;  %v42_v42 = vadd.s32 104, %v3064_v26  ;;  %vm387_vm2 = vcmp.ge.s32.totalorder %v3074_v32, 1 }
  0x27   :  { %2783 = vmatpush3.bf16.msra.mxu1 %v2780_v51  ;;  %v2792_v20 = vpack.c.bf16 %v752_v17, %v751_v15  ;;  %v2766_v21 = vpack.c.bf16 %v722_v19, %v721_v18  ;;  %v753_v22 = vld [vmem:[#allocation3 + $0x170] sm:$0xff]  ;;  %v754_v23 = vld [vmem:[#allocation3 + $0x178] sm:$0xff]  ;;  %vm557_vm3 = vcmp.lt.s32.totalorder %v3076_v33, 15  ;;  %v3094_v45 = vand.u32 15, %v33_v35  ;;  %v3173_v5 = vld [vmem:[%s4170_s1 + $0x2] ss:$0 sm:$0xff] }
  0x28   :  { %301 = vperm.xlu1 %2952, %v246_v43   ;;  %296 = vperm.xlu0 %2951, %v245_v44   ;;  %v2796_v24 = vpack.c.bf16 %v754_v23, %v753_v22  ;;  %v43_v43 = vadd.s32 112, %v3064_v26  ;;  %v3092_v44 = vand.u32 15, %v32_v34  ;;  %v3096_v46 = vand.u32 15, %v34_v36  ;;  %v3215_v19 = vld [vmem:[%s4170_s1 + $0x1] ss:$0 sm:$0xff] }
  0x29   :  { %2755 = vmatpush3.bf16.msra.mxu0 %v2754_v56  ;;  %2785 = vmatprep.subr.bf16.mxu1 %v2784_v0  ;;  %4205 = vst [vmem:[#allocation11_spill] sm:$0xff] %v3094_v45  ;;  %v3098_v47 = vand.u32 15, %v35_v37  ;;  %v3100_v48 = vand.u32 15, %v37_v38  ;;  %v41_v49 = vadd.s32 96, %v3064_v26  ;;  %v3103_v50 = vand.u32 15, %v36_v39 }
  0x2a   :  { %2757 = vmatprep.subr.bf16.mxu0 %v2756_v60  ;;  %4204 = vst [vmem:[#allocation10_spill] sm:$0xff] %v3092_v44  ;;  %4206 = vst [vmem:[#allocation12_spill] sm:$0xff] %v3096_v46  ;;  %v3105_v51 = vand.u32 15, %v38_v40  ;;  %v3107_v52 = vand.u32 15, %v39_v41  ;;  %v40_v53 = vadd.s32 88, %v3064_v26  ;;  %v3120_v57 = vand.u32 15, %v42_v42 }
  0x2b   :  { %2787 = vmatpush3.bf16.msra.mxu1 %v2784_v0  ;;  %4207 = vst [vmem:[#allocation13_spill] sm:$0xff] %v3100_v48  ;;  %v3122_v58 = vand.u32 15, %v43_v43  ;;  %vm370_vm4 = vcmp.lt.s32.totalorder %v3064_v26, 1  ;;  %vm391_vm5 = vcmp.ge.s32.totalorder %v3094_v45, 1  ;;  %vm545_vm6 = vcmp.lt.s32.totalorder %v3092_v44, 15 }
  0x2c   :  { %311 = vperm.xlu1 %2952, %v248_v54   ;;  %306 = vperm.xlu0 %2951, %v247_v55   ;;  %4208 = vst [vmem:[#allocation14_spill] sm:$0xff] %v3107_v52  ;;  %v4175_v54 = vmov 0.0   ;;  %4209 = vst [vmem:[#allocation15_spill] sm:$0xff] %v3120_v57  ;;  %vm393_vm7 = vcmp.ge.s32.totalorder %v3098_v47, 1  ;;  %vm547_vm8 = vcmp.lt.s32.totalorder %v3096_v46, 15  ;;  %vm395_vm9 = vcmp.ge.s32.totalorder %v3100_v48, 1 }
  0x2d   :  { %2759 = vmatpush3.bf16.msra.mxu0 %v2758_v3  ;;  %2789 = vmatprep.subr.bf16.mxu1 %v2788_v9  ;;  %v3113_v55 = vsel %vm389_vm0, 1.0, %v4175_v54  ;;  %v3118_v56 = vsel %vm543_vm1, 1.0, %v4175_v54  ;;  %4210 = vst [vmem:[#allocation16_spill] sm:$0xff] %v3122_v58  ;;  %v3128_v59 = vsel %vm387_vm2, 1.0, %v4175_v54  ;;  %v3133_v60 = vsel %vm557_vm3, 1.0, %v4175_v54 }
  0x2e   :  { %2761 = vmatprep.subr.bf16.mxu0 %v2760_v7  ;;  %v3140_v61 = vand.u32 15, %v41_v49  ;;  %vm549_vm10 = vcmp.lt.s32.totalorder %v3103_v50, 15  ;;  %vm397_vm11 = vcmp.ge.s32.totalorder %v3107_v52, 1  ;;  %vm551_vm12 = vcmp.lt.s32.totalorder %v3105_v51, 15  ;;  %v3156_v0 = vld [vmem:[%s4170_s1] ss:$0 sm:$0xff] }
  0x2f   :  { %2791 = vmatpush3.bf16.msra.mxu1 %v2788_v9  ;;  %vm401_vm13 = vcmp.ge.s32.totalorder %v3122_v58, 1  ;;  %vm555_vm14 = vcmp.lt.s32.totalorder %v3120_v57, 15  ;;  %vm789_vm15 = vcmp.ge.s32.totalorder %v3074_v32, 2  ;;  %v3159_v1 = vsel %vm545_vm6, 1.0, %v4175_v54 }
  0x30   :  { %321 = vperm.xlu1 %2952, %v250_v62   ;;  %316 = vperm.xlu0 %2951, %v249_v63   ;;  %4211 = vst [vmem:[#allocation17_spill] sm:$0xff] %v3140_v61  ;;  %v3145_v62 = vand.u32 15, %v40_v53  ;;  %v3148_v63 = vsel %vm391_vm5, 1.0, %v4175_v54  ;;  %v3162_v2 = vsel %vm393_vm7, 1.0, %v4175_v54  ;;  %v3165_v3 = vsel %vm547_vm8, 1.0, %v4175_v54 }
  0x31   :  { %2763 = vmatpush3.bf16.msra.mxu0 %v2762_v12  ;;  %2793 = vmatprep.subr.bf16.mxu1 %v2792_v20  ;;  %v3168_v4 = vsel %vm395_vm9, 1.0, %v4175_v54  ;;  %vm525_vm0 = vcmp.lt.s32.totalorder %v3064_v26, 7  ;;  %v3177_v6 = vsel %vm549_vm10, 1.0, %v4175_v54  ;;  %v3180_v7 = vsel %vm397_vm11, 1.0, %v4175_v54 }
  0x32   :  { %2765 = vmatprep.subr.bf16.mxu0 %v2764_v16  ;;  %v3183_v8 = vsel %vm551_vm12, 1.0, %v4175_v54  ;;  %vm399_vm1 = vcmp.ge.s32.totalorder %v3140_v61, 1  ;;  %v3189_v11 = vsel %vm401_vm13, 1.0, %v4175_v54  ;;  %v3194_v12 = vsel %vm555_vm14, 1.0, %v4175_v54 }
  0x33   :  { %2795 = vmatpush3.bf16.msra.mxu1 %v2792_v20  ;;  %vm553_vm2 = vcmp.lt.s32.totalorder %v3145_v62, 15  ;;  %v3200_v13 = vsel %vm789_vm15, 1.0, %v4175_v54  ;;  %vm887_vm3 = vcmp.lt.s32.totalorder %v3069_v30, 14  ;;  %vm791_vm5 = vcmp.ge.s32.totalorder %v3071_v31, 2 }
  0x34   :  { %2797 = vmatprep.subr.bf16.mxu1 %v2796_v24  ;;  %v3209_v18 = vsel %vm399_vm1, 1.0, %v4175_v54  ;;  %vm889_vm6 = vcmp.lt.s32.totalorder %v3092_v44, 14  ;;  %v3218_v22 = vsel %vm553_vm2, 1.0, %v4175_v54  ;;  %vm793_vm7 = vcmp.ge.s32.totalorder %v3094_v45, 2 }
  0x35   :  { %2767 = vmatpush3.bf16.msra.mxu0 %v2766_v21  ;;  %v3223_v27 = vsel %vm887_vm3, 1.0, %v4175_v54  ;;  %v3226_v28 = vsel %vm791_vm5, 1.0, %v4175_v54  ;;  %vm891_vm8 = vcmp.lt.s32.totalorder %v3096_v46, 14  ;;  %v3234_v36 = vsel %vm889_vm6, 1.0, %v4175_v54 }
  0x36   :  { %v3238_v40 = vsel %vm793_vm7, 1.0, %v4175_v54  ;;  %v3242_v49 = vsel %vm891_vm8, 1.0, %v4175_v54  ;;  %vm869_vm9 = vcmp.lt.s32.totalorder %v3064_v26, 6  ;;  %vm772_vm10 = vcmp.lt.s32.totalorder %v3064_v26, 2 }
  0x37   :  { %2799 = vmatpush3.bf16.msra.mxu1 %v2796_v24  ;;  %vm795_vm11 = vcmp.ge.s32.totalorder %v3098_v47, 2  ;;  %vm895_vm12 = vcmp.lt.s32.totalorder %v3105_v51, 14  ;;  %vm897_vm13 = vcmp.lt.s32.totalorder %v3145_v62, 14  ;;  %vm1373_vm5 = vcmp.lt.s32.totalorder %v3064_v26, 4  ;;  %v2029_v26 = vld [vmem:[#allocation3 + $0x470] sm:$0xff] }
  0x93   :  { %v262_v9 = vpop.permute.xlu1 %261  ;;  %v257_v10 = vpop.permute.xlu0 %256 }
  0x94   :  { %v339_v14 = vmul.f32 %v3156_v0, %v262_v9  ;;  %v338_v15 = vmul.f32 %v3156_v0, %v257_v10  ;;  %v494_v16 = vmul.f32 %v3173_v5, %v262_v9  ;;  %v493_v17 = vmul.f32 %v3173_v5, %v257_v10 }
  0x95   :  { %v457_v23 = vmul.f32 %v3215_v19, %v262_v9  ;;  %v3245_v53 = vmul.f32 %v3215_v19, %v257_v10 }
  0x96   :  { %v355_v20 = vrot.slane %v339_v14, 7  ;;  %v354_v21 = vrot.slane %v338_v15, 7  ;;  %v510_v37 = vrot.slane %v494_v16, 1  ;;  %v509_v38 = vrot.slane %v493_v17, 1 }
  0x97   :  { %v267_v24 = vpop.permute.xlu1 %266  ;;  %v332_v25 = vpop.permute.xlu0 %331 }
  0x98   :  { %v385_v29 = vsel %vm370_vm4, %v354_v21, %v355_v20  ;;  %v340_v34 = vmul.f32 %v3156_v0, %v267_v24  ;;  %v495_v35 = vmul.f32 %v3173_v5, %v267_v24  ;;  %v353_v39 = vmul.f32 %v3156_v0, %v332_v25 }
  0x99   :  { %v508_v43 = vmul.f32 %v3173_v5, %v332_v25  ;;  %v473_v9 = vadd.f32 %v457_v23, %v385_v29  ;;  %v458_v14 = vmul.f32 %v3215_v19, %v267_v24  ;;  %v3255_v54 = vsel %vm525_vm0, %v509_v38, %v510_v37 }
  0x9a   :  { %v356_v41 = vrot.slane %v340_v34, 7  ;;  %v511_v42 = vrot.slane %v495_v35, 1  ;;  %v369_v15 = vrot.slane %v353_v39, 7  ;;  %v471_v29 = vmul.f32 %v3215_v19, %v332_v25 }
  0x9b   :  { %v272_v16 = vpop.permute.xlu1 %271  ;;  %v327_v17 = vpop.permute.xlu0 %326  ;;  %v524_v35 = vrot.slane %v508_v43, 1 }
  0x9c   :  { %v384_v45 = vsel %vm370_vm4, %v355_v20, %v356_v41  ;;  %v539_v34 = vsel %vm525_vm0, %v510_v37, %v511_v42  ;;  %v341_v31 = vmul.f32 %v3156_v0, %v272_v16  ;;  %v386_v24 = vsel %vm370_vm4, %v369_v15, %v354_v21 }
  0x9d   :  { %v437_v10 = vmul.f32 %v3113_v55, %v384_v45  ;;  %v591_v23 = vmul.f32 %v3118_v56, %v539_v34  ;;  %v541_v20 = vsel %vm525_vm0, %v524_v35, %v509_v38  ;;  %v496_v43 = vmul.f32 %v3173_v5, %v272_v16 }
  0x9e   :  { %v357_v39 = vrot.slane %v341_v31, 7  ;;  %v3266_v46 = vmul.f32 %v3128_v59, %v386_v24  ;;  %v459_v37 = vmul.f32 %v3215_v19, %v272_v16  ;;  %v3270_v45 = vmul.f32 %v3156_v0, %v327_v17 }
  0x9f   :  { %v474_v32 = vadd.f32 %v458_v14, %v437_v10  ;;  %v282_v55 = vpop.permute.xlu1 %281  ;;  %v277_v56 = vpop.permute.xlu0 %276  ;;  %v3272_v21 = vadd.f32 %v591_v23, %v473_v9  ;;  %v512_v38 = vrot.slane %v496_v43, 1  ;;  %v3277_v31 = vmul.f32 %v3173_v5, %v327_v17 }
  0xa0   :  { %v383_v25 = vsel %vm370_vm4, %v356_v41, %v357_v39  ;;  %v605_v14 = vmul.f32 %v3133_v60, %v541_v20  ;;  %v4181_v59 = vrot.slane %v3270_v45, 7  ;;  %v3282_v16 = vmul.f32 %v3215_v19, %v327_v17 }
  0xa1   :  { %v343_v34 = vmul.f32 %v3156_v0, %v282_v55  ;;  %v475_v10 = vadd.f32 %v459_v37, %v383_v25  ;;  %v538_v9 = vsel %vm525_vm0, %v511_v42, %v512_v38  ;;  %v498_v23 = vmul.f32 %v3173_v5, %v282_v55  ;;  %v3297_v37 = vld [vmem:[%s4170_s1 + $0x3] ss:$0 sm:$0xff] }
  0xa2   :  { %v342_v41 = vmul.f32 %v3156_v0, %v277_v56  ;;  %v608_v24 = vadd.f32 %v538_v9, %v474_v32  ;;  %v371_v60 = vsel %vm370_vm4, %v4181_v59, %v369_v15  ;;  %v461_v25 = vmul.f32 %v3215_v19, %v282_v55 }
  0xa3   :  { %v359_v17 = vrot.slane %v343_v34, 7  ;;  %v292_v43 = vpop.permute.xlu1 %291  ;;  %v487_v42 = vadd.f32 %v471_v29, %v371_v60  ;;  %v460_v32 = vmul.f32 %v3215_v19, %v277_v56  ;;  %v514_v30 = vrot.slane %v498_v23, 1  ;;  %v287_v59 = vpop.permute.xlu0 %286 }
  0xa4   :  { %v358_v44 = vrot.slane %v342_v41, 7  ;;  %v3302_v9 = vadd.f32 %v3297_v37, %v608_v24  ;;  %v497_v15 = vmul.f32 %v3173_v5, %v277_v56  ;;  %v345_v34 = vmul.f32 %v3156_v0, %v292_v43 }
  0xa5   :  { %v621_v20 = vadd.f32 %v605_v14, %v487_v42  ;;  %v3311_v55 = vmul.f32 %v3173_v5, %v292_v43  ;;  %v4212_v24 = vrot.slane %v3277_v31, 1 }
  0xa6   :  { %v381_v58 = vsel %vm370_vm4, %v358_v44, %v359_v17  ;;  %v382_v29 = vsel %vm370_vm4, %v357_v39, %v358_v44  ;;  %v513_v14 = vrot.slane %v497_v15, 1  ;;  %v463_v44 = vmul.f32 %v3215_v19, %v292_v43 }
  0xa7   :  { %v3318_v56 = vsel %vm525_vm0, %v4212_v24, %v524_v35  ;;  %v439_v23 = vmul.f32 %v3148_v63, %v382_v29  ;;  %v3322_v60 = vadd.f32 %v3297_v37, %v621_v20  ;;  %v477_v42 = vadd.f32 %v461_v25, %v381_v58  ;;  %v302_v61 = vpop.permute.xlu1 %301 }
  0xa8   :  { %v344_v39 = vmul.f32 %v3156_v0, %v287_v59  ;;  %v537_v41 = vsel %vm525_vm0, %v512_v38, %v513_v14  ;;  %v361_v33 = vrot.slane %v345_v34, 7  ;;  %v516_v35 = vrot.slane %v3311_v55, 1  ;;  %v297_v34 = vpop.permute.xlu0 %296 }
  0xa9   :  { %v476_v52 = vadd.f32 %v460_v32, %v439_v23  ;;  %v4213_v24 = vmax.f32 %v3302_v9, 0.0  ;;  %v536_v20 = vsel %vm525_vm0, %v513_v14, %v514_v30  ;;  %v593_v58 = vmul.f32 %v3159_v1, %v537_v41 }
  0xaa   :  { %v360_v43 = vrot.slane %v344_v39, 7  ;;  %v4192_v25 = vmax.f32 %v3322_v60, 0.0  ;;  %v499_v32 = vmul.f32 %v3173_v5, %v287_v59  ;;  %v3339_v38 = vmul.f32 %v3156_v0, %v302_v61 }
  0xab   :  { %v3331_v63 = vrot.slane %v4213_v24, 1  ;;  %v610_v15 = vadd.f32 %v536_v20, %v476_v52  ;;  %v609_v29 = vadd.f32 %v593_v58, %v475_v10  ;;  %v462_v23 = vmul.f32 %v3215_v19, %v287_v59  ;;  %v312_v57 = vpop.permute.xlu1 %311 }
  0xac   :  { %v380_v55 = vsel %vm370_vm4, %v359_v17, %v360_v43  ;;  %v465_v14 = vmul.f32 %v3215_v19, %v302_v61  ;;  %v379_v52 = vsel %vm370_vm4, %v360_v43, %v361_v33  ;;  %v515_v39 = vrot.slane %v499_v32, 1 }
  0xad   :  { %v3346_v1 = vadd.f32 %v3297_v37, %v610_v15  ;;  %v441_v41 = vmul.f32 %v3162_v2, %v380_v55  ;;  %v3352_v24 = vadd.f32 %v3297_v37, %v609_v29  ;;  %v363_v10 = vrot.slane %v3339_v38, 7 }
  0xae   :  { %v3356_v17 = vmul.f32 %v3173_v5, %v302_v61  ;;  %v346_v59 = vmul.f32 %v3156_v0, %v297_v34  ;;  %v3361_v20 = vrot.slane %v4192_v25, 1  ;;  %v535_v2 = vsel %vm525_vm0, %v514_v30, %v515_v39 }
  0xaf   :  { %v4195_v58 = vmax.f32 %v3346_v1, 0.0  ;;  %v478_v43 = vadd.f32 %v462_v23, %v441_v41  ;;  %v4196_v15 = vmax.f32 %v3352_v24, 0.0  ;;  %v534_v32 = vsel %vm525_vm0, %v515_v39, %v516_v35 }
  0xb0   :  { %v595_v61 = vmul.f32 %v3165_v3, %v535_v2  ;;  %v362_v38 = vrot.slane %v346_v59, 7  ;;  %v479_v29 = vadd.f32 %v463_v44, %v379_v52  ;;  %v518_v48 = vrot.slane %v3356_v17, 1  ;;  %v307_v2 = vpop.permute.xlu0 %306 }
  0xb1   :  { %v612_v55 = vadd.f32 %v534_v32, %v478_v43  ;;  %v501_v25 = vmul.f32 %v3173_v5, %v297_v34  ;;  %v3374_v23 = vrot.slane %v4195_v58, 1  ;;  %v464_v52 = vmul.f32 %v3215_v19, %v297_v34 }
  0xb2   :  { %v611_v30 = vadd.f32 %v595_v61, %v477_v42  ;;  %v377_v41 = vsel %vm370_vm4, %v362_v38, %v363_v10  ;;  %v378_v39 = vsel %vm370_vm4, %v361_v33, %v362_v38  ;;  %v3387_v59 = vrot.slane %v4196_v15, 1 }
  0xb3   :  { %v3381_v3 = vadd.f32 %v3297_v37, %v612_v55  ;;  %v443_v44 = vmul.f32 %v3168_v4, %v378_v39  ;;  %v517_v17 = vrot.slane %v501_v25, 1  ;;  %v3393_v43 = vmul.f32 %v3156_v0, %v312_v57 }
  0xb4   :  { %v3390_v42 = vadd.f32 %v3297_v37, %v611_v30  ;;  %v3396_v33 = vmul.f32 %v3173_v5, %v312_v57  ;;  %v481_v61 = vadd.f32 %v465_v14, %v377_v41  ;;  %v467_v30 = vmul.f32 %v3215_v19, %v312_v57  ;;  %v322_v14 = vpop.permute.xlu1 %321 }
  0xb5   :  { %v4197_v32 = vmax.f32 %v3381_v3, 0.0  ;;  %v480_v4 = vadd.f32 %v464_v52, %v443_v44  ;;  %v533_v25 = vsel %vm525_vm0, %v516_v35, %v517_v17  ;;  %v532_v38 = vsel %vm525_vm0, %v517_v17, %v518_v48 }
  0xb6   :  { %v4198_v34 = vmax.f32 %v3390_v42, 0.0  ;;  %v597_v55 = vmul.f32 %v3177_v6, %v533_v25  ;;  %v4199_v58 = vrot.slane %v3393_v43, 7  ;;  %v348_v44 = vmul.f32 %v3156_v0, %v307_v2 }
  0xb7   :  { %v614_v39 = vadd.f32 %v532_v38, %v480_v4  ;;  %v3411_v35 = vrot.slane %v4197_v32, 1  ;;  %v503_v52 = vmul.f32 %v3173_v5, %v307_v2  ;;  %v472_v6 = vadd.f32 %v3245_v53, %v3266_v46 }
  0xb8   :  { %v613_v41 = vadd.f32 %v597_v55, %v479_v29  ;;  %v364_v17 = vrot.slane %v348_v44, 7  ;;  %v466_v4 = vmul.f32 %v3215_v19, %v307_v2  ;;  %v628_v25 = vadd.f32 %v3297_v37, %v3272_v21 }
  0xb9   :  { %v3417_v57 = vadd.f32 %v3297_v37, %v614_v39  ;;  %v519_v32 = vrot.slane %v503_v52, 1  ;;  %v606_v29 = vadd.f32 %v3255_v54, %v472_v6  ;;  %v351_v55 = vmul.f32 %v3156_v0, %v322_v14  ;;  %v317_v52 = vpop.permute.xlu0 %316 }
  0xba   :  { %v3423_v38 = vadd.f32 %v3297_v37, %v613_v41  ;;  %v3429_v46 = vrot.slane %v4198_v34, 1  ;;  %v375_v53 = vsel %vm370_vm4, %v364_v17, %v4199_v58  ;;  %v376_v21 = vsel %vm370_vm4, %v363_v10, %v364_v17 }
  0xbb   :  { %v644_v2 = vmax.f32 %v628_v25, 0.0  ;;  %v445_v54 = vmul.f32 %v3180_v7, %v376_v21  ;;  %v469_v41 = vmul.f32 %v3215_v19, %v322_v14  ;;  %v3441_v6 = vadd.f32 %v467_v30, %v375_v53 }
  0xbc   :  { %v531_v34 = vsel %vm525_vm0, %v518_v48, %v519_v32  ;;  %v627_v58 = vadd.f32 %v3297_v37, %v606_v29  ;;  %v4214_v17 = vrot.slane %v3396_v33, 1  ;;  %v367_v21 = vrot.slane %v351_v55, 7 }
  0xbd   :  { %v660_v15 = vrot.slane %v644_v2, 1  ;;  %v482_v10 = vadd.f32 %v466_v4, %v445_v54  ;;  %v599_v7 = vmul.f32 %v3183_v8, %v531_v34  ;;  %v506_v30 = vmul.f32 %v3173_v5, %v322_v14 }
  0xbe   :  { %v530_v25 = vsel %vm525_vm0, %v519_v32, %v4214_v17  ;;  %v643_v39 = vmax.f32 %v627_v58, 0.0  ;;  %v350_v29 = vmul.f32 %v3156_v0, %v317_v52  ;;  %v4215_v4 = vrot.slane %v3270_v45, 7 }
  0xbf   :  { %v688_v48 = vsel %vm525_vm0, %v660_v15, %v3331_v63  ;;  %v615_v53 = vadd.f32 %v599_v7, %v481_v61  ;;  %v616_v44 = vadd.f32 %v530_v25, %v482_v10  ;;  %v522_v34 = vrot.slane %v506_v30, 1 }
  0xc0   :  { %v372_v54 = vsel %vm370_vm4, %v367_v21, %v4215_v4  ;;  %v3461_v32 = vmax.f32 %v644_v2, %v688_v48  ;;  %v659_v8 = vrot.slane %v643_v39, 1  ;;  %v366_v14 = vrot.slane %v350_v29, 7 }
  0xc1   :  { %v449_v58 = vmul.f32 %v3189_v11, %v372_v54  ;;  %v4216_v55 = vmax.f32 %v3417_v57, 0.0  ;;  %v3470_v0 = vadd.f32 %v3297_v37, %v615_v53  ;;  %v3473_v45 = vadd.f32 %v3297_v37, %v616_v44 }
  0xc2   :  { %v854_v61 = vrot.slane %v3461_v32, 2  ;;  %v689_v2 = vsel %vm525_vm0, %v659_v8, %v660_v15  ;;  %v690_v11 = vsel %vm525_vm0, %v3361_v20, %v659_v8  ;;  %v4217_v25 = vrot.slane %v3277_v31, 1 }
  0xc3   :  { %v3467_v17 = vrot.slane %v4216_v55, 1  ;;  %v486_v10 = vadd.f32 %v3282_v16, %v449_v58  ;;  %v652_v30 = vmax.f32 %v3470_v0, 0.0  ;;  %v653_v44 = vmax.f32 %v3473_v45, 0.0 }
  0xc4   :  { %v527_v7 = vsel %vm525_vm0, %v522_v34, %v4217_v25  ;;  %v3488_v48 = vmax.f32 %v643_v39, %v689_v2  ;;  %v4218_v29 = vmax.f32 %v3322_v60, 0.0  ;;  %v373_v31 = vsel %vm370_vm4, %v366_v14, %v367_v21 }
  0xc5   :  { %v603_v53 = vmul.f32 %v3194_v12, %v527_v7  ;;  %v620_v4 = vadd.f32 %v3318_v56, %v486_v10  ;;  %v4219_v16 = vrot.slane %v3393_v43, 7  ;;  %v4220_v8 = vmax.f32 %v3423_v38, 0.0 }
  0xc6   :  { %v3492_v15 = vmax.f32 %v4218_v29, %v690_v11  ;;  %v3506_v60 = vrot.slane %v652_v30, 1  ;;  %1018 = vmatprep.mubr.f32.mxu0 %v3488_v48  ;;  %v853_v12 = vrot.slane %v3488_v48, 2  ;;  %v468_v56 = vmul.f32 %v3215_v19, %v317_v52 }
  0xc7   :  { %v374_v54 = vsel %vm370_vm4, %v4219_v16, %v366_v14  ;;  %v666_v39 = vrot.slane %v4220_v8, 1  ;;  %v3513_v21 = vrot.slane %v653_v44, 1  ;;  %v485_v58 = vadd.f32 %v469_v41, %v373_v31 }
  0xc8   :  { %v447_v43 = vmul.f32 %v3209_v18, %v374_v54  ;;  %v505_v14 = vmul.f32 %v3173_v5, %v317_v52  ;;  %v756_v55 = vrot.slane %v3488_v48, 6  ;;  %v884_v2 = vsel %vm869_vm9, %v853_v12, %v854_v61  ;;  %v4233_v48 = vld [vmem:[#allocation14_spill] sm:$0xff] }
  0xc9   :  { %v771_v11 = vrot.slane %v3492_v15, 6  ;;  %v687_v19 = vsel %vm525_vm0, %v3331_v63, %v3387_v59  ;;  %v3528_v10 = vadd.f32 %v3297_v37, %v620_v4  ;;  %2586 = vmatprep.mubr.f32.mxu1 %v884_v2  ;;  %v619_v41 = vadd.f32 %v603_v53, %v485_v58 }
  0xca   :  { %v484_v18 = vadd.f32 %v468_v56, %v447_v43  ;;  %v521_v5 = vrot.slane %v505_v14, 1  ;;  %vm893_vm4 = vcmp.lt.s32.totalorder %v3103_v50, 14  ;;  %v757_v25 = vrot.slane %v3461_v32, 6 }
  0xcb   :  { %v788_v52 = vsel %vm772_vm10, %v771_v11, %v756_v55  ;;  %v4221_v7 = vmax.f32 %v3302_v9, 0.0  ;;  %v686_v63 = vsel %vm525_vm0, %v3387_v59, %v3374_v23  ;;  %v4222_v4 = vrot.slane %v3396_v33, 1 }
  0xcc   :  { %v528_v53 = vsel %vm525_vm0, %v521_v5, %v522_v34  ;;  %v3551_v16 = vadd.f32 %v3297_v37, %v619_v41  ;;  %v837_v9 = vmul.f32 %v3200_v13, %v788_v52  ;;  %v4223_v59 = vmax.f32 %v3352_v24, 0.0 }
  0xcd   :  { %v3538_v29 = vmax.f32 %v4221_v7, %v687_v19  ;;  %v529_v31 = vsel %vm525_vm0, %v4222_v4, %v521_v5  ;;  %v618_v8 = vadd.f32 %v528_v53, %v484_v18  ;;  %v685_v58 = vsel %vm525_vm0, %v3374_v23, %v3429_v46 }
  0xce   :  { %v601_v54 = vmul.f32 %v3218_v22, %v529_v31  ;;  %v694_v43 = vmax.f32 %v4223_v59, %v686_v63  ;;  %v656_v34 = vmax.f32 %v3551_v16, 0.0  ;;  %1019 = vmatmul.mubr.f32.vlgmr.msra.gmra.mrb[0].mxu0 %v837_v9  ;;  %v684_v13 = vsel %vm525_vm0, %v3429_v46, %v3411_v35 }
  0xcf   :  { %v855_v56 = vrot.slane %v3538_v29, 2  ;;  %v758_v33 = vrot.slane %v3538_v29, 6  ;;  %v639_v24 = vadd.f32 %v3297_v37, %v618_v8  ;;  %1023 = vmatprep.mubr.f32.mxu0 %v3461_v32  ;;  %v787_v19 = vsel %vm772_vm10, %v756_v55, %v757_v25 }
  0xd0   :  { %v617_v22 = vadd.f32 %v601_v54, %v3441_v6  ;;  %v856_v2 = vrot.slane %v694_v43, 2  ;;  %v4224_v46 = vmax.f32 %v3346_v1, 0.0  ;;  %v3585_v32 = vrot.slane %v656_v34, 1 }
  0xd1   :  { %v883_v14 = vsel %vm869_vm9, %v854_v61, %v855_v56  ;;  %v786_v18 = vsel %vm772_vm10, %v757_v25, %v758_v33  ;;  %v655_v41 = vmax.f32 %v639_v24, 0.0  ;;  %v4225_v1 = vmax.f32 %v3390_v42, 0.0 }
  0xd2   :  { %v935_v23 = vmul.f32 %v3223_v27, %v883_v14  ;;  %v3580_v5 = vmax.f32 %v4224_v46, %v685_v58  ;;  %v638_v6 = vadd.f32 %v3297_v37, %v617_v22  ;;  %v882_v61 = vsel %vm869_vm9, %v855_v56, %v856_v2  ;;  %1024 = vmatmul.mubr.f32.gmra.mrb[2].mxu0 %v787_v19 }
  0xd3   :  { %v839_v27 = vmul.f32 %v3226_v28, %v786_v18  ;;  %v3593_v52 = vmax.f32 %v4225_v1, %v684_v13  ;;  %v683_v37 = vsel %vm525_vm0, %v3411_v35, %v666_v39  ;;  %v671_v7 = vrot.slane %v655_v41, 1  ;;  %1028 = vmatprep.mubr.f32.mxu0 %v3538_v29 }
  0xd4   :  { %2587 = vmatmul.mubr.f32.vlgmr.msra.gmra.mrb[0].mxu1 %v935_v23  ;;  %v857_v55 = vrot.slane %v3580_v5, 2  ;;  %v654_v25 = vmax.f32 %v638_v6, 0.0  ;;  %v4226_v63 = vmax.f32 %v3381_v3, 0.0  ;;  %v682_v28 = vsel %vm525_vm0, %v666_v39, %v3467_v17 }
  0xd5   :  { %2589 = vmatprep.mubr.f32.mxu1 %v882_v61  ;;  %v858_v4 = vrot.slane %v3593_v52, 2  ;;  %v759_v31 = vrot.slane %v694_v43, 6  ;;  %v4227_v35 = vmax.f32 %v3423_v38, 0.0  ;;  %v4228_v8 = vmov 0.0  }
  0xd6   :  { %v3601_v53 = vmax.f32 %v4226_v63, %v683_v37  ;;  %v881_v42 = vsel %vm869_vm9, %v856_v2, %v857_v55  ;;  %v670_v29 = vrot.slane %v654_v25, 1  ;;  %v2235_v56 = vsel %vm893_vm4, 1.0, %v4228_v8  ;;  %1029 = vmatmul.mubr.f32.gmra.mrb[4].mxu0 %v839_v27 }
  0xd7   :  { %v3611_v9 = vmax.f32 %v4227_v35, %v682_v28  ;;  %v937_v54 = vmul.f32 %v3234_v36, %v881_v42  ;;  %v677_v39 = vsel %vm525_vm0, %v671_v7, %v3585_v32  ;;  %v880_v59 = vsel %vm869_vm9, %v857_v55, %v858_v4  ;;  %1033 = vmatprep.mubr.f32.mxu0 %v694_v43  ;;  %v4230_v35 = vld [vmem:[#allocation15_spill] sm:$0xff] }
  0xd8   :  { %v859_v3 = vrot.slane %v3601_v53, 2  ;;  %v760_v58 = vrot.slane %v3580_v5, 6  ;;  %v657_v36 = vmax.f32 %v3528_v10, 0.0  ;;  %v681_v22 = vsel %vm525_vm0, %v3467_v17, %v3506_v60 }
  0xd9   :  { %v860_v38 = vrot.slane %v3611_v9, 2  ;;  %2590 = vmatmul.mubr.f32.gmra.mrb[2].mxu1 %v937_v54  ;;  %v680_v24 = vsel %vm525_vm0, %v3506_v60, %v3513_v21  ;;  %v785_v14 = vsel %vm772_vm10, %v758_v33, %v759_v31  ;;  %v4229_v43 = vmax.f32 %v3417_v57, 0.0 }
  0xda   :  { %v879_v13 = vsel %vm869_vm9, %v858_v4, %v859_v3  ;;  %2592 = vmatprep.mubr.f32.mxu1 %v880_v59  ;;  %v784_v19 = vsel %vm772_vm10, %v759_v31, %v760_v58  ;;  %v3651_v60 = vmax.f32 %v652_v30, %v680_v24  ;;  %v3656_v33 = vmax.f32 %v655_v41, %v677_v39 }
  0xdb   :  { %v939_v10 = vmul.f32 %v3242_v49, %v879_v13  ;;  %v3642_v2 = vmax.f32 %v4229_v43, %v681_v22  ;;  %v878_v17 = vsel %vm869_vm9, %v859_v3, %v860_v38  ;;  %v679_v49 = vsel %vm525_vm0, %v3513_v21, %v670_v29  ;;  %1034 = vmatmul.mubr.f32.gmra.mrb[6].mxu0 %v785_v14 }
  0xdc   :  { %v3661_v23 = vmax.f32 %v653_v44, %v679_v49  ;;  %v678_v18 = vsel %vm525_vm0, %v670_v29, %v671_v7  ;;  %1038 = vmatprep.mubr.f32.mxu0 %v3580_v5  ;;  %v862_v0 = vrot.slane %v3651_v60, 2  ;;  %v2236_v30 = vsel %vm895_vm12, 1.0, %v4228_v8 }
  0xdd   :  { %v861_v57 = vrot.slane %v3642_v2, 2  ;;  %2593 = vmatmul.mubr.f32.gmra.mrb[4].mxu1 %v939_v10  ;;  %v3668_v21 = vmax.f32 %v654_v25, %v678_v18  ;;  %v673_v46 = vrot.slane %v657_v36, 1  ;;  %v841_v6 = vmul.f32 %v3238_v40, %v784_v19 }
  0xde   :  { %2595 = vmatprep.mubr.f32.mxu1 %v878_v17  ;;  %v761_v44 = vrot.slane %v3593_v52, 6  ;;  %v863_v41 = vrot.slane %v3661_v23, 2  ;;  %v762_v55 = vrot.slane %v3601_v53, 6  ;;  %v865_v40 = vrot.slane %v3656_v33, 2 }
  0xdf   :  { %v877_v45 = vsel %vm869_vm9, %v860_v38, %v861_v57  ;;  %v876_v5 = vsel %vm869_vm9, %v861_v57, %v862_v0  ;;  %v864_v27 = vrot.slane %v3668_v21, 2  ;;  %1039 = vmatmul.mubr.f32.gmra.mrb[8].mxu0 %v841_v6  ;;  %v676_v37 = vsel %vm525_vm0, %v3585_v32, %v673_v46  ;;  %v4234_v6 = vld [vmem:[#allocation17_spill] sm:$0xff] }
  0xe0   :  { %v941_v61 = vmul.f32 %v2235_v56, %v877_v45  ;;  %v875_v1 = vsel %vm869_vm9, %v862_v0, %v863_v41  ;;  %v675_v25 = vsel %vm525_vm0, %v673_v46, %v3361_v20  ;;  %1043 = vmatprep.mubr.f32.mxu0 %v3593_v52  ;;  %v3692_v63 = vmax.f32 %v656_v34, %v676_v37  ;;  %v1341_v37 = vld [vmem:[#allocation3 + $0x288] sm:$0xff] }
  0xe1   :  { %v943_v7 = vmul.f32 %v2236_v30, %v875_v1  ;;  %v3694_v28 = vmax.f32 %v657_v36, %v675_v25  ;;  %v783_v32 = vsel %vm772_vm10, %v760_v58, %v761_v44  ;;  %v874_v42 = vsel %vm869_vm9, %v863_v41, %v864_v27  ;;  %v4231_v58 = vld [vmem:[#allocation13_spill] sm:$0xff] }
  0xe2   :  { %2596 = vmatmul.mubr.f32.gmra.mrb[6].mxu1 %v941_v61  ;;  %v782_v20 = vsel %vm772_vm10, %v761_v44, %v762_v55  ;;  %v2227_v52 = vsel %vm795_vm11, 1.0, %v4228_v8  ;;  %v873_v16 = vsel %vm869_vm9, %v864_v27, %v865_v40  ;;  %v2237_v34 = vsel %vm897_vm13, 1.0, %v4228_v8  ;;  %v4232_v36 = vld [vmem:[#allocation9_spill] sm:$0xff] }
  0xe3   :  { %2598 = vmatprep.mubr.f32.mxu1 %v876_v5  ;;  %1044 = vmatmul.mubr.f32.gmra.mrb[10].mxu0 %v783_v32  ;;  %v866_v4 = vrot.slane %v3692_v63, 2  ;;  %v867_v31 = vrot.slane %v3694_v28, 2  ;;  %vm899_vm14 = vcmp.lt.s32.totalorder %v4230_v35, 14  ;;  %v843_v29 = vmul.f32 %v2227_v52, %v782_v20  ;;  %v4235_v5 = vld [vmem:[#allocation16_spill] sm:$0xff] }
  0xe4   :  { %1048 = vmatprep.mubr.f32.mxu0 %v3601_v53  ;;  %v945_v54 = vmul.f32 %v2237_v34, %v873_v16  ;;  %v763_v3 = vrot.slane %v3611_v9, 6  ;;  %v764_v56 = vrot.slane %v3642_v2, 6  ;;  %v2238_v59 = vsel %vm899_vm14, 1.0, %v4228_v8  ;;  %v1346_v52 = vld [vmem:[#allocation3 + $0x2b0] sm:$0xff]  ;;  %v1347_v16 = vld [vmem:[#allocation3 + $0x2b8] sm:$0xff]  ;;  %v1349_v34 = vld [vmem:[#allocation3 + $0x2c8] sm:$0xff] }
  0xe5   :  { %v871_v39 = vsel %vm869_vm9, %v866_v4, %v867_v31  ;;  %v868_v38 = vrot.slane %v3492_v15, 2  ;;  %vm797_vm15 = vcmp.ge.s32.totalorder %v4231_v58, 2  ;;  %v872_v53 = vsel %vm869_vm9, %v865_v40, %v866_v4  ;;  %v1340_v40 = vld [vmem:[#allocation3 + $0x280] sm:$0xff]  ;;  %v1350_v4 = vld [vmem:[#allocation3 + $0x2d0] sm:$0xff] }
  0xe6   :  { %2599 = vmatmul.mubr.f32.gmra.mrb[8].mxu1 %v943_v7  ;;  %vm901_vm0 = vcmp.lt.s32.totalorder %v4232_v36, 14  ;;  %v781_v13 = vsel %vm772_vm10, %v762_v55, %v763_v3  ;;  %v947_v22 = vmul.f32 %v2238_v59, %v871_v39  ;;  %v780_v24 = vsel %vm772_vm10, %v763_v3, %v764_v56  ;;  %v1342_v7 = vld [vmem:[#allocation3 + $0x290] sm:$0xff]  ;;  %v1352_v3 = vld [vmem:[#allocation3 + $0x2e0] sm:$0xff] }
  0xe7   :  { %2601 = vmatprep.mubr.f32.mxu1 %v874_v42  ;;  %1049 = vmatmul.mubr.f32.gmra.mrb[12].mxu0 %v843_v29  ;;  %v2228_v14 = vsel %vm797_vm15, 1.0, %v4228_v8  ;;  %v2239_v10 = vsel %vm901_vm0, 1.0, %v4228_v8  ;;  %v870_v43 = vsel %vm869_vm9, %v867_v31, %v868_v38  ;;  %v765_v49 = vrot.slane %v3651_v60, 6  ;;  %v1345_v42 = vld [vmem:[#allocation3 + $0x2a8] sm:$0xff]  ;;  %v1351_v29 = vld [vmem:[#allocation3 + $0x2d8] sm:$0xff]  ;;  %v1354_v59 = vld [vmem:[#allocation3 + $0x2f0] sm:$0xff] }
  0xe8   :  { %1053 = vmatprep.mubr.f32.mxu0 %v3611_v9  ;;  %v885_v9 = vsel %vm869_vm9, %v868_v38, %v853_v12  ;;  %v845_v17 = vmul.f32 %v2228_v14, %v780_v24  ;;  %v766_v57 = vrot.slane %v3661_v23, 6  ;;  %vm799_vm1 = vcmp.ge.s32.totalorder %v4233_v48, 2  ;;  %v1355_v38 = vld [vmem:[#allocation3 + $0x2f8] sm:$0xff]  ;;  %v1308_v24 = vld [vmem:[#allocation3 + $0x180] sm:$0xff] }
  0xe9   :  { %v949_v19 = vmul.f32 %v2239_v10, %v885_v9  ;;  %v779_v12 = vsel %vm772_vm10, %v764_v56, %v765_v49  ;;  %v2229_v18 = vsel %vm799_vm1, 1.0, %v4228_v8  ;;  %v767_v30 = vrot.slane %v3668_v21, 6  ;;  %v1353_v56 = vld [vmem:[#allocation3 + $0x2e8] sm:$0xff] }
  0xea   :  { %2602 = vmatmul.mubr.f32.gmra.mrb[10].mxu1 %v945_v54  ;;  %v768_v46 = vrot.slane %v3656_v33, 6  ;;  %vm801_vm2 = vcmp.ge.s32.totalorder %v4234_v6, 2  ;;  %v769_v41 = vrot.slane %v3692_v63, 6  ;;  %v770_v61 = vrot.slane %v3694_v28, 6  ;;  %v1309_v9 = vld [vmem:[#allocation3 + $0x188] sm:$0xff] }
  0xeb   :  { %2604 = vmatprep.mubr.f32.mxu1 %v872_v53  ;;  %1054 = vmatmul.mubr.f32.gmra.mrb[14].mxu0 %v781_v13  ;;  %v2230_v44 = vsel %vm801_vm2, 1.0, %v4228_v8  ;;  %vm803_vm3 = vcmp.ge.s32.totalorder %v4235_v5, 2  ;;  %v2832_v25 = vpack.c.bf16 %v1341_v37, %v1340_v40  ;;  %v2852_v54 = vpack.c.bf16 %v1351_v29, %v1350_v4  ;;  %v1324_v13 = vld [vmem:[#allocation3 + $0x200] sm:$0xff]  ;;  %v1317_v40 = vld [vmem:[#allocation3 + $0x1c8] sm:$0xff]  ;;  %v1334_v37 = vld [vmem:[#allocation3 + $0x250] sm:$0xff] }
  0xec   :  { %1058 = vmatprep.mubr.f32.mxu0 %v3642_v2  ;;  %v778_v2 = vsel %vm772_vm10, %v765_v49, %v766_v57  ;;  %v776_v45 = vsel %vm772_vm10, %v767_v30, %v768_v46  ;;  %v774_v27 = vsel %vm772_vm10, %v769_v41, %v770_v61  ;;  %v2231_v55 = vsel %vm803_vm3, 1.0, %v4228_v8  ;;  %v1339_v4 = vld [vmem:[#allocation3 + $0x278] sm:$0xff] }
  0xed   :  { %v847_v0 = vmul.f32 %v2229_v18, %v778_v2  ;;  %v773_v1 = vsel %vm772_vm10, %v770_v61, %v771_v11  ;;  %2833 = vmatprep.subr.bf16.mxu0 %v2832_v25  ;;  %v1348_v11 = vld [vmem:[#allocation3 + $0x2c0] sm:$0xff]  ;;  %v2856_v39 = vpack.c.bf16 %v1353_v56, %v1352_v3  ;;  %v2860_v53 = vpack.c.bf16 %v1355_v38, %v1354_v59  ;;  %v1329_v18 = vld [vmem:[#allocation3 + $0x228] sm:$0xff]  ;;  %v1315_v61 = vld [vmem:[#allocation3 + $0x1b8] sm:$0xff] }
  0xee   :  { %2605 = vmatmul.mubr.f32.gmra.mrb[12].mxu1 %v947_v22  ;;  %2835 = vmatpush3.bf16.msra.mxu0 %v2832_v25  ;;  %v2848_v31 = vpack.c.bf16 %v1349_v34, %v1348_v11  ;;  %v1325_v22 = vld [vmem:[#allocation3 + $0x208] sm:$0xff]  ;;  %v2802_v10 = vpack.c.bf16 %v1309_v9, %v1308_v24  ;;  %v1328_v2 = vld [vmem:[#allocation3 + $0x220] sm:$0xff]  ;;  %v1335_v25 = vld [vmem:[#allocation3 + $0x258] sm:$0xff]  ;;  %vm1463_vm4 = vcmp.lt.s32.totalorder %v3105_v51, 12  ;;  %vm1465_vm11 = vcmp.lt.s32.totalorder %v3145_v62, 12 }
  0xef   :  { %2607 = vmatprep.mubr.f32.mxu1 %v870_v43  ;;  %1059 = vmatmul.mubr.f32.gmra.mrb[16].mxu0 %v845_v17  ;;  %v2800_v14 = vpack.c.bf16 %v1325_v22, %v1324_v13  ;;  %v1326_v43 = vld [vmem:[#allocation3 + $0x210] sm:$0xff]  ;;  %v1327_v17 = vld [vmem:[#allocation3 + $0x218] sm:$0xff]  ;;  %v1321_v11 = vld [vmem:[#allocation3 + $0x1e8] sm:$0xff]  ;;  %vm1467_vm13 = vcmp.lt.s32.totalorder %v4230_v35, 12  ;;  %vm1396_vm0 = vcmp.ge.s32.totalorder %v3098_v47, 4  ;;  %vm1398_vm1 = vcmp.ge.s32.totalorder %v4231_v58, 4 }
  0xf0   :  { %1063 = vmatprep.mubr.f32.mxu0 %v3651_v60  ;;  %v777_v60 = vsel %vm772_vm10, %v766_v57, %v767_v30  ;;  %v2804_v49 = vpack.c.bf16 %v1327_v17, %v1326_v43  ;;  %v1311_v57 = vld [vmem:[#allocation3 + $0x198] sm:$0xff]  ;;  %v2808_v30 = vpack.c.bf16 %v1329_v18, %v1328_v2  ;;  %v1338_v34 = vld [vmem:[#allocation3 + $0x270] sm:$0xff]  ;;  %v3774_v38 = vld [vmem:[%s4170_s1 + $0x4] ss:$0 sm:$0xff]  ;;  %vm1400_vm2 = vcmp.ge.s32.totalorder %v4233_v48, 4 }
  0xf1   :  { %2801 = vmatprep.subr.bf16.mxu1 %v2800_v14  ;;  %v2828_v29 = vpack.c.bf16 %v1339_v4, %v1338_v34  ;;  %v1323_v3 = vld [vmem:[#allocation3 + $0x1f8] sm:$0xff]  ;;  %vm1402_vm3 = vcmp.ge.s32.totalorder %v4234_v6, 4 }
  0xf2   :  { %2608 = vmatmul.mubr.f32.gmra.mrb[14].mxu1 %v949_v19  ;;  %v1310_v19 = vld [vmem:[#allocation3 + $0x190] sm:$0xff] }
  0xf3   :  { %1064 = vmatmul.mubr.f32.gmra.mrb[18].mxu0 %v779_v12  ;;  %2803 = vmatpush3.bf16.msra.mxu1 %v2802_v10  ;;  %v2806_v12 = vpack.c.bf16 %v1311_v57, %v1310_v19 }
  0xf4   :  { %1068 = vmatprep.mubr.f32.mxu0 %v3661_v23  ;;  %v849_v23 = vmul.f32 %v2230_v44, %v776_v45  ;;  %2805 = vmatprep.subr.bf16.mxu1 %v2804_v49  ;;  %v1330_v45 = vld [vmem:[#allocation3 + $0x230] sm:$0xff]  ;;  %v1331_v44 = vld [vmem:[#allocation3 + $0x238] sm:$0xff] }
  0xf7   :  { %1069 = vmatmul.mubr.f32.gmra.mrb[20].mxu0 %v847_v0  ;;  %2807 = vmatpush3.bf16.msra.mxu1 %v2806_v12  ;;  %v1312_v0 = vld [vmem:[#allocation3 + $0x1a0] sm:$0xff] }
  0xf8   :  { %1073 = vmatprep.mubr.f32.mxu0 %v3668_v21  ;;  %v775_v21 = vsel %vm772_vm10, %v768_v46, %v769_v41  ;;  %v1313_v46 = vld [vmem:[#allocation3 + $0x1a8] sm:$0xff]  ;;  %2809 = vmatprep.subr.bf16.mxu1 %v2808_v30  ;;  %v2812_v41 = vpack.c.bf16 %v1331_v44, %v1330_v45  ;;  %vm1461_vm10 = vcmp.lt.s32.totalorder %v3103_v50, 12 }
  0xfb   :  { %1074 = vmatmul.mubr.f32.gmra.mrb[22].mxu0 %v777_v60  ;;  %v2810_v60 = vpack.c.bf16 %v1313_v46, %v1312_v0 }
  0xfc   :  { %1078 = vmatprep.mubr.f32.mxu0 %v3656_v33  ;;  %v851_v33 = vmul.f32 %v2231_v55, %v774_v27  ;;  %v1332_v27 = vld [vmem:[#allocation3 + $0x240] sm:$0xff]  ;;  %v1333_v55 = vld [vmem:[#allocation3 + $0x248] sm:$0xff] }
  0xfd   :  { %2811 = vmatpush3.bf16.msra.mxu1 %v2810_v60 }
  0xfe   :  { %2813 = vmatprep.subr.bf16.mxu1 %v2812_v41 }
  0xff   :  { %1079 = vmatmul.mubr.f32.gmra.mrb[24].mxu0 %v849_v23  ;;  %v1314_v23 = vld [vmem:[#allocation3 + $0x1b0] sm:$0xff] }
 0x100   :  { %1083 = vmatprep.mubr.f32.mxu0 %v3692_v63  ;;  %v1343_v63 = vld [vmem:[#allocation3 + $0x298] sm:$0xff] }
 0x101   :  { %v2836_v32 = vpack.c.bf16 %v1343_v63, %v1342_v7  ;;  %v2820_v63 = vpack.c.bf16 %v1335_v25, %v1334_v37 }
 0x103   :  { %1084 = vmatmul.mubr.f32.gmra.mrb[26].mxu0 %v775_v21  ;;  %2837 = vmatprep.subr.bf16.mxu0 %v2836_v32  ;;  %v2814_v21 = vpack.c.bf16 %v1315_v61, %v1314_v23 }
 0x104   :  { %1088 = vmatprep.mubr.f32.mxu0 %v3694_v28  ;;  %2839 = vmatpush3.bf16.msra.mxu0 %v2836_v32  ;;  %v1344_v28 = vld [vmem:[#allocation3 + $0x2a0] sm:$0xff]  ;;  %v1318_v32 = vld [vmem:[#allocation3 + $0x1d0] sm:$0xff] }
 0x105   :  { %v2840_v20 = vpack.c.bf16 %v1345_v42, %v1344_v28  ;;  %2815 = vmatpush3.bf16.msra.mxu1 %v2814_v21  ;;  %v1319_v28 = vld [vmem:[#allocation3 + $0x1d8] sm:$0xff]  ;;  %v1336_v42 = vld [vmem:[#allocation3 + $0x260] sm:$0xff] }
 0x107   :  { %1089 = vmatmul.mubr.f32.gmra.mrb[28].mxu0 %v851_v33  ;;  %2841 = vmatprep.subr.bf16.mxu0 %v2840_v20  ;;  %v1316_v33 = vld [vmem:[#allocation3 + $0x1c0] sm:$0xff] }
 0x108   :  { %1093 = vmatprep.mubr.f32.mxu0 %v3492_v15  ;;  %v2844_v15 = vpack.c.bf16 %v1347_v16, %v1346_v52  ;;  %2843 = vmatpush3.bf16.msra.mxu0 %v2840_v20  ;;  %v2818_v7 = vpack.c.bf16 %v1317_v40, %v1316_v33  ;;  %v1337_v20 = vld [vmem:[#allocation3 + $0x268] sm:$0xff]  ;;  %v2822_v52 = vpack.c.bf16 %v1319_v28, %v1318_v32 }
 0x109   :  { %v2824_v16 = vpack.c.bf16 %v1337_v20, %v1336_v42 }
 0x10a   :  { %2845 = vmatprep.subr.bf16.mxu0 %v2844_v15 }
 0x10b   :  { %1094 = vmatmul.mubr.f32.gmra.mrb[30].mxu0 %v773_v1  ;;  %v2816_v1 = vpack.c.bf16 %v1333_v55, %v1332_v27 }
 0x10c   :  { %2847 = vmatpush3.bf16.msra.mxu0 %v2844_v15  ;;  %v1320_v15 = vld [vmem:[#allocation3 + $0x1e0] sm:$0xff] }
 0x10d   :  { %2849 = vmatprep.subr.bf16.mxu0 %v2848_v31  ;;  %2817 = vmatprep.subr.bf16.mxu1 %v2816_v1 }
 0x10e   :  { %2819 = vmatpush3.bf16.msra.mxu1 %v2818_v7 }
 0x10f   :  { %2821 = vmatprep.subr.bf16.mxu1 %v2820_v63 }
 0x110   :  { %2851 = vmatpush3.bf16.msra.mxu0 %v2848_v31  ;;  %v2826_v31 = vpack.c.bf16 %v1321_v11, %v1320_v15 }
 0x111   :  { %2853 = vmatprep.subr.bf16.mxu0 %v2852_v54 }
 0x112   :  { %2823 = vmatpush3.bf16.msra.mxu1 %v2822_v52 }
 0x113   :  { %2825 = vmatprep.subr.bf16.mxu1 %v2824_v16 }
 0x114   :  { %2855 = vmatpush3.bf16.msra.mxu0 %v2852_v54  ;;  %v1322_v54 = vld [vmem:[#allocation3 + $0x1f0] sm:$0xff] }
 0x115   :  { %2857 = vmatprep.subr.bf16.mxu0 %v2856_v39  ;;  %v2830_v56 = vpack.c.bf16 %v1323_v3, %v1322_v54 }
 0x116   :  { %2827 = vmatpush3.bf16.msra.mxu1 %v2826_v31 }
 0x117   :  { %2829 = vmatprep.subr.bf16.mxu1 %v2828_v29 }
 0x118   :  { %2859 = vmatpush3.bf16.msra.mxu0 %v2856_v39 }
 0x119   :  { %2861 = vmatprep.subr.bf16.mxu0 %v2860_v53 }
 0x11a   :  { %2831 = vmatpush3.bf16.msra.mxu1 %v2830_v56 }
 0x11c   :  { %2863 = vmatpush3.bf16.msra.mxu0 %v2860_v53 }
 0x1a1   :  { %v2293_v39 = vpop.f32.mrb[0].mxu0 }
 0x1a2   :  { %v2294_v59 = vpop.f32.mrb[1].mxu0 }
 0x1a3   :  { %v2295_v53 = vadd.f32 %v2294_v59, %v2293_v39 }
 0x1a5   :  { %v2296_v13 = vpop.f32.mrb[2].mxu0  ;;  %v1021_v24 = vadd.f32 %v2295_v53, %v3774_v38 }
 0x1a6   :  { %v2297_v14 = vpop.f32.mrb[3].mxu0 }
 0x1a7   :  { %v2588_v22 = vpop.f32.mrb[0].mxu1  ;;  %v2298_v10 = vadd.f32 %v2297_v14, %v2296_v13 }
 0x1a8   :  { %v1165_v9 = vpop.f32.mrb[1].mxu1 }
 0x1a9   :  { %v1166_v43 = vadd.f32 %v1165_v9, %v1021_v24  ;;  %v1026_v17 = vadd.f32 %v2298_v10, %v3774_v38  ;;  %v2299_v19 = vpop.f32.mrb[4].mxu0  ;;  %v4236_v24 = vld [vmem:[#allocation6_spill] sm:$0xff] }
 0x1aa   :  { %v2300_v57 = vpop.f32.mrb[5].mxu0  ;;  %vm1455_vm6 = vcmp.lt.s32.totalorder %v4236_v24, 12 }
 0x1ab   :  { %v1171_v12 = vadd.f32 %v2588_v22, %v1026_v17  ;;  %v1244_v2 = vmax.f32 %v1166_v43, 0.0  ;;  %v2301_v18 = vadd.f32 %v2300_v57, %v2299_v19 }
 0x1ac   :  { %v2591_v49 = vpop.f32.mrb[2].mxu1 }
 0x1ad   :  { %v1175_v0 = vpop.f32.mrb[3].mxu1  ;;  %v1245_v30 = vmax.f32 %v1171_v12, 0.0  ;;  %v1031_v46 = vadd.f32 %v2301_v18, %v3774_v38  ;;  %v3779_v41 = vrot.slane %v1244_v2, 2 }
 0x1ae   :  { %v2302_v60 = vpop.f32.mrb[6].mxu0 }
 0x1af   :  { %v2303_v44 = vpop.f32.mrb[7].mxu0  ;;  %v1261_v23 = vrot.slane %v1245_v30, 2  ;;  %v1176_v61 = vadd.f32 %v1175_v0, %v1031_v46 }
 0x1b0   :  { %v2594_v45 = vpop.f32.mrb[4].mxu1  ;;  %v2304_v21 = vadd.f32 %v2303_v44, %v2302_v60 }
 0x1b1   :  { %v1185_v27 = vpop.f32.mrb[5].mxu1  ;;  %v1290_v55 = vsel %vm869_vm9, %v3779_v41, %v1261_v23  ;;  %v1246_v33 = vmax.f32 %v1176_v61, 0.0 }
 0x1b2   :  { %v1036_v1 = vadd.f32 %v2304_v21, %v3774_v38  ;;  %v2305_v40 = vpop.f32.mrb[8].mxu0  ;;  %v3785_v37 = vmax.f32 %v1244_v2, %v1290_v55  ;;  %v2249_v2 = vsel %vm1455_vm6, 1.0, %v4228_v8  ;;  %vm1404_vm6 = vcmp.ge.s32.totalorder %v4235_v5, 4  ;;  %v1925_v5 = vld [vmem:[#allocation3 + $0x390] sm:$0xff] }
 0x1b3   :  { %v2306_v7 = vpop.f32.mrb[9].mxu0  ;;  %v1262_v63 = vrot.slane %v1246_v33, 2 }
 0x1b4   :  { %v1181_v32 = vadd.f32 %v2591_v49, %v1036_v1  ;;  %v2307_v28 = vadd.f32 %v2306_v7, %v2305_v40  ;;  %1586 = vmatprep.mubr.f32.mxu1 %v3785_v37  ;;  %v1357_v56 = vrot.slane %v3785_v37, 4 }
 0x1b5   :  { %v2597_v25 = vpop.f32.mrb[6].mxu1  ;;  %v1289_v20 = vsel %vm869_vm9, %v1261_v23, %v1262_v63 }
 0x1b6   :  { %v1195_v42 = vpop.f32.mrb[7].mxu1  ;;  %v1247_v52 = vmax.f32 %v1181_v32, 0.0  ;;  %v1041_v16 = vadd.f32 %v2307_v28, %v3774_v38  ;;  %v2308_v15 = vpop.f32.mrb[10].mxu0  ;;  %v3793_v4 = vmax.f32 %v1245_v30, %v1289_v20  ;;  %v4237_v28 = vld [vmem:[#allocation10_spill] sm:$0xff] }
 0x1b7   :  { %v2309_v34 = vpop.f32.mrb[11].mxu0  ;;  %vm1457_vm7 = vcmp.lt.s32.totalorder %v4237_v28, 12 }
 0x1b8   :  { %v1263_v31 = vrot.slane %v1247_v52, 2  ;;  %v1186_v29 = vadd.f32 %v1185_v27, %v1041_v16  ;;  %v2310_v54 = vadd.f32 %v2309_v34, %v2308_v15  ;;  %v1358_v39 = vrot.slane %v3793_v4, 4 }
 0x1b9   :  { %v3791_v11 = vpop.f32.mrb[8].mxu1 }
 0x1ba   :  { %v1205_v3 = vpop.f32.mrb[9].mxu1  ;;  %v1288_v59 = vsel %vm869_vm9, %v1262_v63, %v1263_v31  ;;  %v1248_v53 = vmax.f32 %v1186_v29, 0.0  ;;  %v1046_v13 = vadd.f32 %v2310_v54, %v3774_v38  ;;  %v2311_v22 = vpop.f32.mrb[12].mxu0  ;;  %v3810_v43 = vsel %vm1373_vm5, %v1357_v56, %v1358_v39 }
 0x1bb   :  { %v3802_v14 = vmax.f32 %v1246_v33, %v1288_v59  ;;  %v2312_v10 = vpop.f32.mrb[13].mxu0  ;;  %2642 = vmatprep.mubr.f32.mxu0 %v3810_v43 }
 0x1bc   :  { %v1264_v17 = vrot.slane %v1248_v53, 2  ;;  %v1191_v19 = vadd.f32 %v2594_v45, %v1046_v13  ;;  %v2313_v49 = vadd.f32 %v2312_v10, %v2311_v22 }
 0x1bd   :  { %v3804_v9 = vpop.f32.mrb[10].mxu1  ;;  %v1359_v12 = vrot.slane %v3802_v14, 4 }
 0x1be   :  { %v3812_v57 = vpop.f32.mrb[11].mxu1  ;;  %v1249_v18 = vmax.f32 %v1191_v19, 0.0  ;;  %v1051_v0 = vadd.f32 %v2313_v49, %v3774_v38  ;;  %v2314_v30 = vpop.f32.mrb[14].mxu0  ;;  %v1287_v46 = vsel %vm869_vm9, %v1263_v31, %v1264_v17 }
 0x1bf   :  { %v3822_v60 = vsel %vm1373_vm5, %v1358_v39, %v1359_v12  ;;  %v2315_v44 = vpop.f32.mrb[15].mxu0  ;;  %v3826_v23 = vmax.f32 %v1247_v52, %v1287_v46  ;;  %v2250_v39 = vsel %vm1457_vm7, 1.0, %v4228_v8 }
 0x1c0   :  { %v1265_v61 = vrot.slane %v1249_v18, 2  ;;  %v1196_v21 = vadd.f32 %v1195_v42, %v1051_v0  ;;  %v1503_v27 = vmul.f32 %v2249_v2, %v3822_v60  ;;  %v2316_v55 = vadd.f32 %v2315_v44, %v2314_v30 }
 0x1c1   :  { %v3824_v45 = vpop.f32.mrb[12].mxu1  ;;  %v1360_v1 = vrot.slane %v3826_v23, 4 }
 0x1c2   :  { %v3829_v33 = vpop.f32.mrb[13].mxu1  ;;  %v1286_v40 = vsel %vm869_vm9, %v1264_v17, %v1265_v61  ;;  %v1250_v7 = vmax.f32 %v1196_v21, 0.0  ;;  %v1056_v63 = vadd.f32 %v2316_v55, %v3774_v38  ;;  %v2317_v32 = vpop.f32.mrb[16].mxu0  ;;  %2643 = vmatmul.mubr.f32.vlgmr.msra.gmra.mrb[32].mxu0 %v1503_v27 }
 0x1c3   :  { %v2318_v42 = vpop.f32.mrb[17].mxu0  ;;  %v3840_v52 = vsel %vm1373_vm5, %v1359_v12, %v1360_v1  ;;  %v3842_v16 = vmax.f32 %v1248_v53, %v1286_v40 }
 0x1c4   :  { %v1266_v15 = vrot.slane %v1250_v7, 2  ;;  %v1201_v34 = vadd.f32 %v2597_v25, %v1056_v63  ;;  %v2319_v31 = vadd.f32 %v2318_v42, %v2317_v32  ;;  %2645 = vmatprep.mubr.f32.mxu0 %v3840_v52 }
 0x1c5   :  { %v3836_v20 = vpop.f32.mrb[14].mxu1  ;;  %v1361_v54 = vrot.slane %v3842_v16, 4 }
 0x1c6   :  { %v3844_v29 = vpop.f32.mrb[15].mxu1  ;;  %v1251_v59 = vmax.f32 %v1201_v34, 0.0  ;;  %v1061_v13 = vadd.f32 %v2319_v31, %v3774_v38  ;;  %v2320_v22 = vpop.f32.mrb[18].mxu0  ;;  %v1285_v24 = vsel %vm869_vm9, %v1265_v61, %v1266_v15  ;;  %v4238_v61 = vld [vmem:[#allocation12_spill] sm:$0xff] }
 0x1c7   :  { %v2321_v53 = vpop.f32.mrb[19].mxu0  ;;  %v3854_v25 = vsel %vm1373_vm5, %v1360_v1, %v1361_v54  ;;  %v3856_v10 = vmax.f32 %v1249_v18, %v1285_v24  ;;  %vm1459_vm8 = vcmp.lt.s32.totalorder %v4238_v61, 12 }
 0x1c8   :  { %v1267_v17 = vrot.slane %v1251_v59, 2  ;;  %v1206_v19 = vadd.f32 %v1205_v3, %v1061_v13  ;;  %v2322_v49 = vadd.f32 %v2321_v53, %v2320_v22  ;;  %v1505_v12 = vmul.f32 %v2250_v39, %v3854_v25 }
 0x1c9   :  { %v1362_v2 = vrot.slane %v3856_v10, 4  ;;  %v2251_v63 = vsel %vm1459_vm8, 1.0, %v4228_v8 }
 0x1ca   :  { %v1284_v0 = vsel %vm869_vm9, %v1266_v15, %v1267_v17  ;;  %v1252_v30 = vmax.f32 %v1206_v19, 0.0  ;;  %v1066_v46 = vadd.f32 %v2322_v49, %v3774_v38  ;;  %v2323_v44 = vpop.f32.mrb[20].mxu0  ;;  %2646 = vmatmul.mubr.f32.gmra.mrb[34].mxu0 %v1505_v12 }
 0x1cb   :  { %v2324_v21 = vpop.f32.mrb[21].mxu0  ;;  %v3866_v18 = vsel %vm1373_vm5, %v1361_v54, %v1362_v2  ;;  %v3868_v3 = vmax.f32 %v1250_v7, %v1284_v0 }
 0x1cc   :  { %v1268_v27 = vrot.slane %v1252_v30, 2  ;;  %v1211_v55 = vadd.f32 %v3791_v11, %v1066_v46  ;;  %v2325_v1 = vadd.f32 %v2324_v21, %v2323_v44  ;;  %2648 = vmatprep.mubr.f32.mxu0 %v3866_v18  ;;  %v2252_v44 = vsel %vm1461_vm10, 1.0, %v4228_v8 }
 0x1cd   :  { %v1363_v40 = vrot.slane %v3868_v3, 4 }
 0x1ce   :  { %v1253_v32 = vmax.f32 %v1211_v55, 0.0  ;;  %v1071_v28 = vadd.f32 %v2325_v1, %v3774_v38  ;;  %v2326_v42 = vpop.f32.mrb[22].mxu0  ;;  %v1283_v15 = vsel %vm869_vm9, %v1267_v17, %v1268_v27 }
 0x1cf   :  { %v2327_v34 = vpop.f32.mrb[23].mxu0  ;;  %v3879_v7 = vsel %vm1373_vm5, %v1362_v2, %v1363_v40  ;;  %v3881_v11 = vmax.f32 %v1251_v59, %v1283_v15 }
 0x1d0   :  { %v1269_v31 = vrot.slane %v1253_v32, 2  ;;  %v1216_v54 = vadd.f32 %v3812_v57, %v1071_v28  ;;  %v2328_v39 = vadd.f32 %v2327_v34, %v2326_v42  ;;  %v1507_v13 = vmul.f32 %v2251_v63, %v3879_v7 }
 0x1d1   :  { %v1364_v22 = vrot.slane %v3881_v11, 4 }
 0x1d2   :  { %v1282_v24 = vsel %vm869_vm9, %v1268_v27, %v1269_v31  ;;  %v1254_v53 = vmax.f32 %v1216_v54, 0.0  ;;  %v1076_v17 = vadd.f32 %v2328_v39, %v3774_v38  ;;  %v2329_v19 = vpop.f32.mrb[24].mxu0  ;;  %2649 = vmatmul.mubr.f32.gmra.mrb[36].mxu0 %v1507_v13 }
 0x1d3   :  { %v2330_v59 = vpop.f32.mrb[25].mxu0  ;;  %v3892_v49 = vsel %vm1373_vm5, %v1363_v40, %v1364_v22  ;;  %v3894_v57 = vmax.f32 %v1252_v30, %v1282_v24 }
 0x1d4   :  { %v1270_v12 = vrot.slane %v1254_v53, 2  ;;  %v1221_v2 = vadd.f32 %v3804_v9, %v1076_v17  ;;  %v2331_v0 = vadd.f32 %v2330_v59, %v2329_v19  ;;  %2651 = vmatprep.mubr.f32.mxu0 %v3892_v49  ;;  %v2253_v19 = vsel %vm1463_vm4, 1.0, %v4228_v8 }
 0x1d5   :  { %v1365_v46 = vrot.slane %v3894_v57, 4 }
 0x1d6   :  { %v1255_v61 = vmax.f32 %v1221_v2, 0.0  ;;  %v1081_v50 = vadd.f32 %v2331_v0, %v3774_v38  ;;  %v2332_v21 = vpop.f32.mrb[26].mxu0  ;;  %v1281_v27 = vsel %vm869_vm9, %v1269_v31, %v1270_v12 }
 0x1d7   :  { %v2333_v55 = vpop.f32.mrb[27].mxu0  ;;  %v3905_v30 = vsel %vm1373_vm5, %v1364_v22, %v1365_v46  ;;  %v3907_v9 = vmax.f32 %v1253_v32, %v1281_v27 }
 0x1d8   :  { %v1271_v1 = vrot.slane %v1255_v61, 2  ;;  %v1226_v40 = vadd.f32 %v3829_v33, %v1081_v50  ;;  %v2334_v63 = vadd.f32 %v2333_v55, %v2332_v21  ;;  %v1509_v28 = vmul.f32 %v2252_v44, %v3905_v30 }
 0x1d9   :  { %v1366_v42 = vrot.slane %v3907_v9, 4 }
 0x1da   :  { %v1280_v15 = vsel %vm869_vm9, %v1270_v12, %v1271_v1  ;;  %v1256_v34 = vmax.f32 %v1226_v40, 0.0  ;;  %v1086_v31 = vadd.f32 %v2334_v63, %v3774_v38  ;;  %v2335_v54 = vpop.f32.mrb[28].mxu0  ;;  %2652 = vmatmul.mubr.f32.gmra.mrb[38].mxu0 %v1509_v28 }
 0x1db   :  { %v2336_v32 = vpop.f32.mrb[29].mxu0  ;;  %v3918_v39 = vsel %vm1373_vm5, %v1365_v46, %v1366_v42  ;;  %v3920_v33 = vmax.f32 %v1254_v53, %v1280_v15  ;;  %v2254_v15 = vsel %vm1465_vm11, 1.0, %v4228_v8 }
 0x1dc   :  { %v1272_v13 = vrot.slane %v1256_v34, 2  ;;  %v1231_v22 = vadd.f32 %v3824_v45, %v1086_v31  ;;  %v2337_v24 = vadd.f32 %v2336_v32, %v2335_v54  ;;  %2654 = vmatprep.mubr.f32.mxu0 %v3918_v39 }
 0x1dd   :  { %v1367_v17 = vrot.slane %v3920_v33, 4 }
 0x1de   :  { %v1257_v59 = vmax.f32 %v1231_v22, 0.0  ;;  %v1091_v51 = vadd.f32 %v2337_v24, %v3774_v38  ;;  %v2338_v12 = vpop.f32.mrb[30].mxu0  ;;  %v1279_v2 = vsel %vm869_vm9, %v1271_v1, %v1272_v13  ;;  %v4239_v24 = vld [vmem:[#allocation8_spill] sm:$0xff] }
 0x1df   :  { %v2339_v0 = vpop.f32.mrb[31].mxu0  ;;  %v3931_v53 = vsel %vm1373_vm5, %v1366_v42, %v1367_v17  ;;  %v3933_v45 = vmax.f32 %v1255_v61, %v1279_v2  ;;  %vm1390_vm12 = vcmp.ge.s32.totalorder %v4239_v24, 4  ;;  %v2255_v2 = vsel %vm1467_vm13, 1.0, %v4228_v8  ;;  %v1933_v24 = vld [vmem:[#allocation3 + $0x3d0] sm:$0xff] }
 0x1e0   :  { %v1273_v46 = vrot.slane %v1257_v59, 2  ;;  %v1236_v44 = vadd.f32 %v3844_v29, %v1091_v51  ;;  %v2340_v50 = vadd.f32 %v2339_v0, %v2338_v12  ;;  %v1511_v21 = vmul.f32 %v2253_v19, %v3931_v53 }
 0x1e1   :  { %v1368_v27 = vrot.slane %v3933_v45, 4  ;;  %v2241_v12 = vsel %vm1390_vm12, 1.0, %v4228_v8 }
 0x1e2   :  { %v1278_v55 = vsel %vm869_vm9, %v1272_v13, %v1273_v46  ;;  %v1258_v40 = vmax.f32 %v1236_v44, 0.0  ;;  %v1096_v1 = vadd.f32 %v2340_v50, %v3774_v38  ;;  %2655 = vmatmul.mubr.f32.gmra.mrb[40].mxu0 %v1511_v21 }
 0x1e3   :  { %v3944_v61 = vsel %vm1373_vm5, %v1367_v17, %v1368_v27  ;;  %v3946_v63 = vmax.f32 %v1256_v34, %v1278_v55  ;;  %v4241_v55 = vld [vmem:[#allocation11_spill] sm:$0xff] }
 0x1e4   :  { %v1274_v29 = vrot.slane %v1258_v40, 2  ;;  %v1241_v28 = vadd.f32 %v3836_v20, %v1096_v1  ;;  %2657 = vmatprep.mubr.f32.mxu0 %v3944_v61  ;;  %vm1394_vm15 = vcmp.ge.s32.totalorder %v4241_v55, 4  ;;  %v1920_v55 = vld [vmem:[#allocation3 + $0x368] sm:$0xff] }
 0x1e5   :  { %v1369_v42 = vrot.slane %v3946_v63, 4 }
 0x1e6   :  { %v1259_v31 = vmax.f32 %v1241_v28, 0.0  ;;  %v1277_v38 = vsel %vm869_vm9, %v1273_v46, %v1274_v29 }
 0x1e7   :  { %v3956_v62 = vsel %vm1373_vm5, %v1368_v27, %v1369_v42  ;;  %v3958_v54 = vmax.f32 %v1257_v59, %v1277_v38  ;;  %v4240_v27 = vld [vmem:[#allocation7_spill] sm:$0xff]  ;;  %v1931_v38 = vld [vmem:[#allocation3 + $0x3c0] sm:$0xff] }
 0x1e8   :  { %v1275_v34 = vrot.slane %v1259_v31, 2  ;;  %v1513_v32 = vmul.f32 %v2254_v15, %v3956_v62  ;;  %vm1392_vm14 = vcmp.ge.s32.totalorder %v4240_v27, 4  ;;  %v1913_v15 = vld [vmem:[#allocation3 + $0x330] sm:$0xff]  ;;  %v2018_v27 = vld [vmem:[#allocation3 + $0x418] sm:$0xff] }
 0x1e9   :  { %v1370_v20 = vrot.slane %v3958_v54, 4  ;;  %v2242_v37 = vsel %vm1392_vm14, 1.0, %v4228_v8 }
 0x1ea   :  { %v1276_v13 = vsel %vm869_vm9, %v1274_v29, %v1275_v34  ;;  %v1291_v22 = vsel %vm869_vm9, %v1275_v34, %v3779_v41  ;;  %2658 = vmatmul.mubr.f32.gmra.mrb[42].mxu0 %v1513_v32  ;;  %vm1469_vm9 = vcmp.lt.s32.totalorder %v4232_v36, 12  ;;  %v1930_v29 = vld [vmem:[#allocation3 + $0x3b8] sm:$0xff] }
 0x1eb   :  { %v3969_v17 = vmax.f32 %v1259_v31, %v1291_v22  ;;  %v3973_v19 = vsel %vm1373_vm5, %v1369_v42, %v1370_v20  ;;  %v3975_v59 = vmax.f32 %v1258_v40, %v1276_v13  ;;  %v2256_v21 = vsel %vm1469_vm9, 1.0, %v4228_v8  ;;  %v1914_v31 = vld [vmem:[#allocation3 + $0x338] sm:$0xff]  ;;  %v1916_v13 = vld [vmem:[#allocation3 + $0x348] sm:$0xff] }
 0x1ec   :  { %2660 = vmatprep.mubr.f32.mxu0 %v3973_v19  ;;  %v2243_v40 = vsel %vm1394_vm15, 1.0, %v4228_v8 }
 0x1ed   :  { %v1372_v51 = vrot.slane %v3969_v17, 4  ;;  %v1371_v41 = vrot.slane %v3975_v59, 4 }
 0x1ef   :  { %v1389_v35 = vsel %vm1373_vm5, %v1372_v51, %v1357_v56  ;;  %v1375_v0 = vsel %vm1373_vm5, %v1370_v20, %v1371_v41  ;;  %v1374_v46 = vsel %vm1373_vm5, %v1371_v41, %v1372_v51  ;;  %v1440_v56 = vmul.f32 %v2242_v37, %v3822_v60  ;;  %v1915_v20 = vld [vmem:[#allocation3 + $0x340] sm:$0xff]  ;;  %v1917_v51 = vld [vmem:[#allocation3 + $0x350] sm:$0xff] }
 0x1f0   :  { %v1438_v44 = vmul.f32 %v2241_v12, %v1389_v35  ;;  %v1515_v50 = vmul.f32 %v2255_v2, %v1375_v0  ;;  %v1517_v36 = vmul.f32 %v2256_v21, %v1389_v35  ;;  %v2245_v60 = vsel %vm1398_vm1, 1.0, %v4228_v8  ;;  %v1918_v12 = vld [vmem:[#allocation3 + $0x358] sm:$0xff]  ;;  %v1935_v41 = vld [vmem:[#allocation3 + $0x3e0] sm:$0xff]  ;;  %v1936_v2 = vld [vmem:[#allocation3 + $0x3e8] sm:$0xff] }
 0x1f1   :  { %v1446_v47 = vmul.f32 %v2245_v60, %v3905_v30  ;;  %v2015_v35 = vld [vmem:[#allocation3 + $0x400] sm:$0xff]  ;;  %v2888_v37 = vpack.c.bf16 %v1936_v2, %v1935_v41 }
 0x1f2   :  { %1587 = vmatmul.mubr.f32.vlgmr.msra.gmra.mrb[16].mxu1 %v1438_v44  ;;  %2661 = vmatmul.mubr.f32.gmra.mrb[44].mxu0 %v1515_v50  ;;  %v2886_v44 = vpack.c.bf16 %v1918_v12, %v1917_v51  ;;  %v2982_v50 = vmov 0.0|0.0   ;;  %v2019_v60 = vld [vmem:[#allocation3 + $0x420] sm:$0xff] }
 0x1f3   :  { %1591 = vmatprep.mubr.f32.mxu1 %v3793_v4  ;;  %2663 = vmatprep.mubr.f32.mxu0 %v1374_v46  ;;  %v1442_v4 = vmul.f32 %v2243_v40, %v3854_v25  ;;  %v1923_v25 = vld [vmem:[#allocation3 + $0x380] sm:$0xff] }
 0x1f4   :  { %2896 = vmatprep.subr.bf16.mxu1 %v2982_v50 }
 0x1f6   :  { %1592 = vmatmul.mubr.f32.gmra.mrb[18].mxu1 %v3810_v43  ;;  %2664 = vmatmul.mubr.f32.gmra.mrb[46].mxu0 %v1517_v36 }
 0x1f7   :  { %1596 = vmatprep.mubr.f32.mxu1 %v3802_v14  ;;  %v2244_v14 = vsel %vm1396_vm0, 1.0, %v4228_v8 }
 0x1f8   :  { %v1444_v43 = vmul.f32 %v2244_v14, %v3879_v7  ;;  %v1908_v7 = vld [vmem:[#allocation3 + $0x308] sm:$0xff]  ;;  %v1938_v14 = vld [vmem:[#allocation3 + $0x3f8] sm:$0xff] }
 0x1fa   :  { %1597 = vmatmul.mubr.f32.gmra.mrb[20].mxu1 %v1440_v56  ;;  %v1919_v56 = vld [vmem:[#allocation3 + $0x360] sm:$0xff] }
 0x1fb   :  { %1601 = vmatprep.mubr.f32.mxu1 %v3826_v23  ;;  %v2246_v23 = vsel %vm1400_vm2, 1.0, %v4228_v8 }
 0x1fc   :  { %v1448_v58 = vmul.f32 %v2246_v23, %v3931_v53  ;;  %v1928_v53 = vld [vmem:[#allocation3 + $0x3a8] sm:$0xff]  ;;  %v2890_v23 = vpack.c.bf16 %v1920_v55, %v1919_v56 }
 0x1fe   :  { %1602 = vmatmul.mubr.f32.gmra.mrb[22].mxu1 %v3840_v52  ;;  %v2247_v52 = vsel %vm1402_vm3, 1.0, %v4228_v8 }
 0x1ff   :  { %1606 = vmatprep.mubr.f32.mxu1 %v3842_v16  ;;  %v1450_v48 = vmul.f32 %v2247_v52, %v3956_v62  ;;  %v2248_v16 = vsel %vm1404_vm6, 1.0, %v4228_v8  ;;  %v1932_v62 = vld [vmem:[#allocation3 + $0x3c8] sm:$0xff]  ;;  %v1921_v52 = vld [vmem:[#allocation3 + $0x370] sm:$0xff] }
 0x200   :  { %v1452_v6 = vmul.f32 %v2248_v16, %v1375_v0  ;;  %v2880_v32 = vpack.c.bf16 %v1932_v62, %v1931_v38  ;;  %v2016_v0 = vld [vmem:[#allocation3 + $0x408] sm:$0xff] }
 0x201   :  { %v2897_v21 = vpack.c.bf16 %v2016_v0, %v2015_v35 }
 0x202   :  { %1607 = vmatmul.mubr.f32.gmra.mrb[24].mxu1 %v1442_v4  ;;  %v1937_v4 = vld [vmem:[#allocation3 + $0x3f0] sm:$0xff] }
 0x203   :  { %1611 = vmatprep.mubr.f32.mxu1 %v3856_v10  ;;  %v1924_v10 = vld [vmem:[#allocation3 + $0x388] sm:$0xff]  ;;  %2898 = vmatpush3.bf16.msra.mxu1 %v2897_v21 }
 0x204   :  { %2899 = vmatprep.subr.bf16.mxu1 %v2982_v50 }
 0x206   :  { %1612 = vmatmul.mubr.f32.gmra.mrb[26].mxu1 %v3866_v18  ;;  %v1907_v18 = vld [vmem:[#allocation3 + $0x300] sm:$0xff] }
 0x207   :  { %1616 = vmatprep.mubr.f32.mxu1 %v3868_v3  ;;  %v2864_v3 = vpack.c.bf16 %v1924_v10, %v1923_v25  ;;  %v2022_v25 = vld [vmem:[#allocation3 + $0x438] sm:$0xff] }
 0x209   :  { %2865 = vmatprep.subr.bf16.mxu0 %v2864_v3 }
 0x20a   :  { %1617 = vmatmul.mubr.f32.gmra.mrb[28].mxu1 %v1444_v43 }
 0x20b   :  { %1621 = vmatprep.mubr.f32.mxu1 %v3881_v11  ;;  %v2866_v11 = vpack.c.bf16 %v1908_v7, %v1907_v18 }
 0x20d   :  { %2867 = vmatpush3.bf16.msra.mxu0 %v2866_v11  ;;  %v2023_v11 = vld [vmem:[#allocation3 + $0x440] sm:$0xff] }
 0x20e   :  { %1622 = vmatmul.mubr.f32.gmra.mrb[30].mxu1 %v3892_v49  ;;  %v1926_v49 = vld [vmem:[#allocation3 + $0x398] sm:$0xff] }
 0x20f   :  { %1626 = vmatprep.mubr.f32.mxu1 %v3894_v57  ;;  %v1909_v57 = vld [vmem:[#allocation3 + $0x310] sm:$0xff]  ;;  %v2868_v30 = vpack.c.bf16 %v1926_v49, %v1925_v5  ;;  %v2024_v5 = vld [vmem:[#allocation3 + $0x448] sm:$0xff] }
 0x210   :  { %v2909_v49 = vpack.c.bf16 %v2024_v5, %v2023_v11 }
 0x211   :  { %2869 = vmatprep.subr.bf16.mxu0 %v2868_v30  ;;  %v2026_v30 = vld [vmem:[#allocation3 + $0x458] sm:$0xff] }
 0x212   :  { %1627 = vmatmul.mubr.f32.gmra.mrb[32].mxu1 %v1446_v47  ;;  %v2020_v47 = vld [vmem:[#allocation3 + $0x428] sm:$0xff] }
 0x213   :  { %1631 = vmatprep.mubr.f32.mxu1 %v3907_v9  ;;  %v1910_v9 = vld [vmem:[#allocation3 + $0x318] sm:$0xff]  ;;  %v2903_v16 = vpack.c.bf16 %v2020_v47, %v2019_v60 }
 0x216   :  { %1632 = vmatmul.mubr.f32.gmra.mrb[34].mxu1 %v3918_v39  ;;  %v2870_v39 = vpack.c.bf16 %v1910_v9, %v1909_v57  ;;  %v2025_v57 = vld [vmem:[#allocation3 + $0x450] sm:$0xff] }
 0x217   :  { %1636 = vmatprep.mubr.f32.mxu1 %v3920_v33  ;;  %v1927_v33 = vld [vmem:[#allocation3 + $0x3a0] sm:$0xff] }
 0x218   :  { %2871 = vmatpush3.bf16.msra.mxu0 %v2870_v39  ;;  %v2872_v1 = vpack.c.bf16 %v1928_v53, %v1927_v33  ;;  %v2912_v33 = vpack.c.bf16 %v2026_v30, %v2025_v57  ;;  %v2027_v53 = vld [vmem:[#allocation3 + $0x460] sm:$0xff] }
 0x21a   :  { %1637 = vmatmul.mubr.f32.gmra.mrb[36].mxu1 %v1448_v58  ;;  %2873 = vmatprep.subr.bf16.mxu0 %v2872_v1  ;;  %v2892_v58 = vpack.c.bf16 %v1938_v14, %v1937_v4 }
 0x21b   :  { %1641 = vmatprep.mubr.f32.mxu1 %v3933_v45  ;;  %v1911_v45 = vld [vmem:[#allocation3 + $0x320] sm:$0xff] }
 0x21e   :  { %1642 = vmatmul.mubr.f32.gmra.mrb[38].mxu1 %v3944_v61  ;;  %v1912_v61 = vld [vmem:[#allocation3 + $0x328] sm:$0xff] }
 0x21f   :  { %1646 = vmatprep.mubr.f32.mxu1 %v3946_v63  ;;  %v1929_v63 = vld [vmem:[#allocation3 + $0x3b0] sm:$0xff]  ;;  %v2874_v28 = vpack.c.bf16 %v1912_v61, %v1911_v45  ;;  %v2028_v45 = vld [vmem:[#allocation3 + $0x468] sm:$0xff] }
 0x220   :  { %v2876_v42 = vpack.c.bf16 %v1930_v29, %v1929_v63  ;;  %v2915_v1 = vpack.c.bf16 %v2028_v45, %v2027_v53 }
 0x221   :  { %2875 = vmatpush3.bf16.msra.mxu0 %v2874_v28 }
 0x222   :  { %1647 = vmatmul.mubr.f32.gmra.mrb[40].mxu1 %v1450_v48  ;;  %2877 = vmatprep.subr.bf16.mxu0 %v2876_v42  ;;  %v1922_v48 = vld [vmem:[#allocation3 + $0x378] sm:$0xff] }
 0x223   :  { %1651 = vmatprep.mubr.f32.mxu1 %v3958_v54  ;;  %v2878_v54 = vpack.c.bf16 %v1914_v31, %v1913_v15  ;;  %v2894_v10 = vpack.c.bf16 %v1922_v48, %v1921_v52  ;;  %v4072_v31 = vld [vmem:[%s4170_s1 + $0x5] ss:$0 sm:$0xff] }
 0x225   :  { %2879 = vmatpush3.bf16.msra.mxu0 %v2878_v54 }
 0x226   :  { %1652 = vmatmul.mubr.f32.gmra.mrb[42].mxu1 %v3973_v19  ;;  %v2882_v19 = vpack.c.bf16 %v1916_v13, %v1915_v20  ;;  %2881 = vmatprep.subr.bf16.mxu0 %v2880_v32 }
 0x227   :  { %1656 = vmatprep.mubr.f32.mxu1 %v3975_v59 }
 0x229   :  { %2883 = vmatpush3.bf16.msra.mxu0 %v2882_v19 }
 0x22a   :  { %1657 = vmatmul.mubr.f32.gmra.mrb[44].mxu1 %v1452_v6  ;;  %v2021_v6 = vld [vmem:[#allocation3 + $0x430] sm:$0xff] }
 0x22b   :  { %1661 = vmatprep.mubr.f32.mxu1 %v3969_v17  ;;  %v1934_v17 = vld [vmem:[#allocation3 + $0x3d8] sm:$0xff]  ;;  %v2906_v7 = vpack.c.bf16 %v2022_v25, %v2021_v6 }
 0x22c   :  { %v2884_v59 = vpack.c.bf16 %v1934_v17, %v1933_v24 }
 0x22e   :  { %1662 = vmatmul.mubr.f32.gmra.mrb[46].mxu1 %v1374_v46  ;;  %v2017_v46 = vld [vmem:[#allocation3 + $0x410] sm:$0xff]  ;;  %2885 = vmatprep.subr.bf16.mxu0 %v2884_v59 }
 0x22f   :  { %v2900_v43 = vpack.c.bf16 %v2018_v27, %v2017_v46  ;;  %2887 = vmatpush3.bf16.msra.mxu0 %v2886_v44 }
 0x230   :  { %2889 = vmatprep.subr.bf16.mxu0 %v2888_v37 }
 0x231   :  { %2901 = vmatpush3.bf16.msra.mxu1 %v2900_v43 }
 0x232   :  { %2902 = vmatprep.subr.bf16.mxu1 %v2982_v50 }
 0x233   :  { %2891 = vmatpush3.bf16.msra.mxu0 %v2890_v23 }
 0x234   :  { %2893 = vmatprep.subr.bf16.mxu0 %v2892_v58 }
 0x235   :  { %2904 = vmatpush3.bf16.msra.mxu1 %v2903_v16 }
 0x236   :  { %2905 = vmatprep.subr.bf16.mxu1 %v2982_v50 }
 0x237   :  { %2895 = vmatpush3.bf16.msra.mxu0 %v2894_v10 }
 0x238   :  { %2920 = vmatprep.subr.bf16.mxu0 %v2982_v50 }
 0x239   :  { %2907 = vmatpush3.bf16.msra.mxu1 %v2906_v7 }
 0x23a   :  { %2908 = vmatprep.subr.bf16.mxu1 %v2982_v50 }
 0x23d   :  { %2910 = vmatpush3.bf16.msra.mxu1 %v2909_v49 }
 0x23e   :  { %2911 = vmatprep.subr.bf16.mxu1 %v2982_v50 }
 0x241   :  { %2913 = vmatpush3.bf16.msra.mxu1 %v2912_v33 }
 0x242   :  { %2914 = vmatprep.subr.bf16.mxu1 %v2982_v50 }
 0x245   :  { %2916 = vmatpush3.bf16.msra.mxu1 %v2915_v1 }
 0x246   :  { %2917 = vmatprep.subr.bf16.mxu1 %v2982_v50 }
 0x295   :  { %v4034_v34 = vpop.f32.mrb[32].mxu0 }
 0x296   :  { %v4036_v22 = vpop.f32.mrb[33].mxu0 }
 0x29d   :  { %v4039_v36 = vpop.f32.mrb[34].mxu0 }
 0x29e   :  { %v4041_v40 = vpop.f32.mrb[35].mxu0 }
 0x2a5   :  { %v4045_v18 = vpop.f32.mrb[36].mxu0 }
 0x2a6   :  { %v4047_v3 = vpop.f32.mrb[37].mxu0 }
 0x2ad   :  { %v4052_v9 = vpop.f32.mrb[38].mxu0 }
 0x2ae   :  { %v4054_v39 = vpop.f32.mrb[39].mxu0 }
 0x2b5   :  { %v4058_v61 = vpop.f32.mrb[40].mxu0 }
 0x2b6   :  { %v4060_v63 = vpop.f32.mrb[41].mxu0 }
 0x2bd   :  { %v4063_v29 = vpop.f32.mrb[42].mxu0 }
 0x2be   :  { %v4065_v28 = vpop.f32.mrb[43].mxu0 }
 0x2c5   :  { %v2405_v42 = vpop.f32.mrb[16].mxu1  ;;  %v4067_v15 = vpop.f32.mrb[44].mxu0 }
 0x2c6   :  { %v2406_v38 = vpop.f32.mrb[17].mxu1  ;;  %v4074_v62 = vpop.f32.mrb[45].mxu0 }
 0x2c7   :  { %v2407_v54 = vadd.f32 %v2406_v38, %v2405_v42 }
 0x2c9   :  { %v1589_v32 = vadd.f32 %v2407_v54, %v4072_v31  ;;  %v2408_v20 = vpop.f32.mrb[18].mxu1  ;;  %v4077_v13 = vpop.f32.mrb[46].mxu0 }
 0x2ca   :  { %v2409_v24 = vpop.f32.mrb[19].mxu1  ;;  %v4079_v17 = vpop.f32.mrb[47].mxu0 }
 0x2cb   :  { %v1734_v19 = vadd.f32 %v4036_v22, %v1589_v32  ;;  %v2410_v59 = vadd.f32 %v2409_v24, %v2408_v20 }
 0x2cd   :  { %v1594_v51 = vadd.f32 %v2410_v59, %v4072_v31  ;;  %v2411_v12 = vpop.f32.mrb[20].mxu1  ;;  %v1812_v2 = vmax.f32 %v1734_v19, 0.0 }
 0x2ce   :  { %v2412_v41 = vpop.f32.mrb[21].mxu1 }
 0x2cf   :  { %v1739_v35 = vadd.f32 %v4034_v34, %v1594_v51  ;;  %v2413_v0 = vadd.f32 %v2412_v41, %v2411_v12  ;;  %v4085_v37 = vrot.slane %v1812_v2, 4 }
 0x2d1   :  { %v1813_v46 = vmax.f32 %v1739_v35, 0.0  ;;  %v1599_v44 = vadd.f32 %v2413_v0, %v4072_v31  ;;  %v2414_v21 = vpop.f32.mrb[22].mxu1 }
 0x2d2   :  { %v2415_v27 = vpop.f32.mrb[23].mxu1 }
 0x2d3   :  { %v1829_v56 = vrot.slane %v1813_v46, 4  ;;  %v1744_v55 = vadd.f32 %v4041_v40, %v1599_v44  ;;  %v2416_v22 = vadd.f32 %v2415_v27, %v2414_v21 }
 0x2d5   :  { %v1858_v4 = vsel %vm1373_vm5, %v4085_v37, %v1829_v56  ;;  %v1814_v14 = vmax.f32 %v1744_v55, 0.0  ;;  %v1604_v43 = vadd.f32 %v2416_v22, %v4072_v31  ;;  %v2417_v34 = vpop.f32.mrb[24].mxu1 }
 0x2d6   :  { %v1860_v60 = vmax.f32 %v1812_v2, %v1858_v4  ;;  %v2418_v47 = vpop.f32.mrb[25].mxu1 }
 0x2d7   :  { %v1830_v23 = vrot.slane %v1814_v14, 4  ;;  %v1749_v58 = vadd.f32 %v4039_v36, %v1604_v43  ;;  %v2419_v52 = vadd.f32 %v2418_v47, %v2417_v34 }
 0x2d8   :  { %1876 = vst [vmem:[#allocation2] sm:$0xff] %v1860_v60 }
 0x2d9   :  { %v1857_v48 = vsel %vm1373_vm5, %v1829_v56, %v1830_v23  ;;  %v1815_v40 = vmax.f32 %v1749_v58, 0.0  ;;  %v1609_v16 = vadd.f32 %v2419_v52, %v4072_v31  ;;  %v2420_v6 = vpop.f32.mrb[26].mxu1 }
 0x2da   :  { %v1861_v25 = vmax.f32 %v1813_v46, %v1857_v48  ;;  %v2421_v10 = vpop.f32.mrb[27].mxu1 }
 0x2db   :  { %v1831_v7 = vrot.slane %v1815_v40, 4  ;;  %v1754_v11 = vadd.f32 %v4047_v3, %v1609_v16  ;;  %v2422_v5 = vadd.f32 %v2421_v10, %v2420_v6 }
 0x2dc   :  { %1877 = vst [vmem:[#allocation2 + $0x8] sm:$0xff] %v1861_v25 }
 0x2dd   :  { %v1856_v49 = vsel %vm1373_vm5, %v1830_v23, %v1831_v7  ;;  %v1816_v36 = vmax.f32 %v1754_v11, 0.0  ;;  %v1614_v57 = vadd.f32 %v2422_v5, %v4072_v31  ;;  %v2423_v30 = vpop.f32.mrb[28].mxu1 }
 0x2de   :  { %v1862_v33 = vmax.f32 %v1814_v14, %v1856_v49  ;;  %v2424_v53 = vpop.f32.mrb[29].mxu1 }
 0x2df   :  { %v1832_v45 = vrot.slane %v1816_v36, 4  ;;  %v1759_v1 = vadd.f32 %v4045_v18, %v1614_v57  ;;  %v2425_v42 = vadd.f32 %v2424_v53, %v2423_v30 }
 0x2e0   :  { %1878 = vst [vmem:[#allocation2 + $0x10] sm:$0xff] %v1862_v33 }
 0x2e1   :  { %v1855_v38 = vsel %vm1373_vm5, %v1831_v7, %v1832_v45  ;;  %v1817_v3 = vmax.f32 %v1759_v1, 0.0  ;;  %v1619_v54 = vadd.f32 %v2425_v42, %v4072_v31  ;;  %v2426_v32 = vpop.f32.mrb[30].mxu1 }
 0x2e2   :  { %v1863_v20 = vmax.f32 %v1815_v40, %v1855_v38  ;;  %v2427_v24 = vpop.f32.mrb[31].mxu1 }
 0x2e3   :  { %v1833_v19 = vrot.slane %v1817_v3, 4  ;;  %v1764_v59 = vadd.f32 %v4054_v39, %v1619_v54  ;;  %v2428_v51 = vadd.f32 %v2427_v24, %v2426_v32 }
 0x2e4   :  { %1879 = vst [vmem:[#allocation2 + $0x18] sm:$0xff] %v1863_v20 }
 0x2e5   :  { %v1854_v12 = vsel %vm1373_vm5, %v1832_v45, %v1833_v19  ;;  %v1818_v18 = vmax.f32 %v1764_v59, 0.0  ;;  %v1624_v41 = vadd.f32 %v2428_v51, %v4072_v31  ;;  %v2429_v2 = vpop.f32.mrb[32].mxu1 }
 0x2e6   :  { %v1864_v35 = vmax.f32 %v1816_v36, %v1854_v12  ;;  %v2430_v0 = vpop.f32.mrb[33].mxu1 }
 0x2e7   :  { %v1834_v46 = vrot.slane %v1818_v18, 4  ;;  %v1769_v44 = vadd.f32 %v4052_v9, %v1624_v41  ;;  %v2431_v21 = vadd.f32 %v2430_v0, %v2429_v2 }
 0x2e8   :  { %1880 = vst [vmem:[#allocation2 + $0x20] sm:$0xff] %v1864_v35 }
 0x2e9   :  { %v1853_v27 = vsel %vm1373_vm5, %v1833_v19, %v1834_v46  ;;  %v1819_v39 = vmax.f32 %v1769_v44, 0.0  ;;  %v1629_v56 = vadd.f32 %v2431_v21, %v4072_v31  ;;  %v2432_v55 = vpop.f32.mrb[34].mxu1 }
 0x2ea   :  { %v1865_v22 = vmax.f32 %v1817_v3, %v1853_v27  ;;  %v2433_v4 = vpop.f32.mrb[35].mxu1 }
 0x2eb   :  { %v1835_v14 = vrot.slane %v1819_v39, 4  ;;  %v1774_v43 = vadd.f32 %v4060_v63, %v1629_v56  ;;  %v2434_v34 = vadd.f32 %v2433_v4, %v2432_v55 }
 0x2ec   :  { %1881 = vst [vmem:[#allocation2 + $0x28] sm:$0xff] %v1865_v22 }
 0x2ed   :  { %v1852_v60 = vsel %vm1373_vm5, %v1834_v46, %v1835_v14  ;;  %v1820_v9 = vmax.f32 %v1774_v43, 0.0  ;;  %v1634_v47 = vadd.f32 %v2434_v34, %v4072_v31  ;;  %v2435_v23 = vpop.f32.mrb[36].mxu1 }
 0x2ee   :  { %v1866_v58 = vmax.f32 %v1818_v18, %v1852_v60  ;;  %v2436_v52 = vpop.f32.mrb[37].mxu1 }
 0x2ef   :  { %v1836_v48 = vrot.slane %v1820_v9, 4  ;;  %v1779_v40 = vadd.f32 %v4058_v61, %v1634_v47  ;;  %v2437_v16 = vadd.f32 %v2436_v52, %v2435_v23 }
 0x2f0   :  { %1882 = vst [vmem:[#allocation2 + $0x30] sm:$0xff] %v1866_v58 }
 0x2f1   :  { %v1851_v6 = vsel %vm1373_vm5, %v1835_v14, %v1836_v48  ;;  %v1821_v63 = vmax.f32 %v1779_v40, 0.0  ;;  %v1639_v25 = vadd.f32 %v2437_v16, %v4072_v31  ;;  %v2438_v10 = vpop.f32.mrb[38].mxu1 }
 0x2f2   :  { %v1867_v7 = vmax.f32 %v1819_v39, %v1851_v6  ;;  %v2439_v11 = vpop.f32.mrb[39].mxu1 }
 0x2f3   :  { %v1837_v5 = vrot.slane %v1821_v63, 4  ;;  %v1784_v49 = vadd.f32 %v4065_v28, %v1639_v25  ;;  %v2440_v36 = vadd.f32 %v2439_v11, %v2438_v10  ;;  %v1892_v25 = vld [vmem:[#allocation2] ss:$16 sm:$0x3] }
 0x2f4   :  { %1883 = vst [vmem:[#allocation2 + $0x38] sm:$0xff] %v1867_v7 }
 0x2f5   :  { %v1850_v57 = vsel %vm1373_vm5, %v1836_v48, %v1837_v5  ;;  %v1822_v61 = vmax.f32 %v1784_v49, 0.0  ;;  %v1644_v30 = vadd.f32 %v2440_v36, %v4072_v31  ;;  %v2441_v33 = vpop.f32.mrb[40].mxu1 }
 0x2f6   :  { %v1868_v53 = vmax.f32 %v1820_v9, %v1850_v57  ;;  %v2442_v45 = vpop.f32.mrb[41].mxu1 }
 0x2f7   :  { %v1838_v1 = vrot.slane %v1822_v61, 4  ;;  %v1789_v42 = vadd.f32 %v4063_v29, %v1644_v30  ;;  %v2443_v38 = vadd.f32 %v2442_v45, %v2441_v33  ;;  %v1893_v6 = vld [vmem:[#allocation2] ss:$16 sm:$0xc] }
 0x2f8   :  { %1884 = vst [vmem:[#allocation2 + $0x40] sm:$0xff] %v1868_v53  ;;  %v2107_v45 = vld [vmem:[#allocation3 + $0x480] sm:$0xff] }
 0x2f9   :  { %v1849_v3 = vsel %vm1373_vm5, %v1837_v5, %v1838_v1  ;;  %v1823_v28 = vmax.f32 %v1789_v42, 0.0  ;;  %v1649_v54 = vadd.f32 %v2443_v38, %v4072_v31  ;;  %v2444_v32 = vpop.f32.mrb[42].mxu1  ;;  %v1894_v5 = vor.u32 %v1893_v6, %v1892_v25  ;;  %v2109_v42 = vld [vmem:[#allocation3 + $0x490] sm:$0xff] }
 0x2fa   :  { %v1869_v20 = vmax.f32 %v1821_v63, %v1849_v3  ;;  %v2445_v24 = vpop.f32.mrb[43].mxu1  ;;  %v1900_v63 = vld [vmem:[#allocation2 + $0x8] ss:$16 sm:$0x3] }
 0x2fb   :  { %v1839_v19 = vrot.slane %v1823_v28, 4  ;;  %v1794_v59 = vadd.f32 %v4074_v62, %v1649_v54  ;;  %v2446_v51 = vadd.f32 %v2445_v24, %v2444_v32  ;;  %v2110_v3 = vld [vmem:[#allocation3 + $0x498] sm:$0xff]  ;;  %v2111_v54 = vld [vmem:[#allocation3 + $0x4a0] sm:$0xff]  ;;  %v2112_v32 = vld [vmem:[#allocation3 + $0x4a8] sm:$0xff] }
 0x2fc   :  { %1885 = vst [vmem:[#allocation2 + $0x48] sm:$0xff] %v1869_v20  ;;  %v2927_v20 = vpack.c.bf16 %v2112_v32, %v2111_v54  ;;  %v2113_v24 = vld [vmem:[#allocation3 + $0x4b0] sm:$0xff] }
 0x2fd   :  { %v1848_v12 = vsel %vm1373_vm5, %v1838_v1, %v1839_v19  ;;  %v1824_v29 = vmax.f32 %v1794_v59, 0.0  ;;  %v1654_v18 = vadd.f32 %v2446_v51, %v4072_v31  ;;  %v2447_v41 = vpop.f32.mrb[44].mxu1  ;;  %v2108_v1 = vld [vmem:[#allocation3 + $0x488] sm:$0xff] }
 0x2fe   :  { %v1870_v2 = vmax.f32 %v1822_v61, %v1848_v12  ;;  %v2448_v35 = vpop.f32.mrb[45].mxu1  ;;  %v2921_v38 = vpack.c.bf16 %v2108_v1, %v2107_v45  ;;  %v2116_v51 = vld [vmem:[#allocation3 + $0x4c8] sm:$0xff] }
 0x2ff   :  { %v1840_v0 = vrot.slane %v1824_v29, 4  ;;  %v1799_v46 = vadd.f32 %v4067_v15, %v1654_v18  ;;  %v2449_v44 = vadd.f32 %v2448_v35, %v2447_v41  ;;  %v2118_v18 = vld [vmem:[#allocation3 + $0x4d8] sm:$0xff]  ;;  %v2120_v35 = vld [vmem:[#allocation3 + $0x4e8] sm:$0xff] }
 0x300   :  { %1886 = vst [vmem:[#allocation2 + $0x50] sm:$0xff] %v1870_v2  ;;  %v2119_v2 = vld [vmem:[#allocation3 + $0x4e0] sm:$0xff] }
 0x301   :  { %v1847_v21 = vsel %vm1373_vm5, %v1839_v19, %v1840_v0  ;;  %v1825_v62 = vmax.f32 %v1799_v46, 0.0  ;;  %v1659_v27 = vadd.f32 %v2449_v44, %v4072_v31  ;;  %v2450_v39 = vpop.f32.mrb[46].mxu1  ;;  %v2114_v19 = vld [vmem:[#allocation3 + $0x4b8] sm:$0xff]  ;;  %v2258_v44 = vld [vmem:[%s4170_s1 + $0x6] ss:$0 sm:$0xff] }
 0x302   :  { %v1871_v56 = vmax.f32 %v1823_v28, %v1847_v21  ;;  %v2451_v55 = vpop.f32.mrb[47].mxu1  ;;  %v2924_v28 = vpack.c.bf16 %v2110_v3, %v2109_v42  ;;  %v2930_v59 = vpack.c.bf16 %v2114_v19, %v2113_v24 }
 0x303   :  { %v1841_v22 = vrot.slane %v1825_v62, 4  ;;  %v1804_v4 = vadd.f32 %v4079_v17, %v1659_v27  ;;  %v2452_v14 = vadd.f32 %v2451_v55, %v2450_v39  ;;  %v2122_v55 = vld [vmem:[#allocation3 + $0x4f8] sm:$0xff] }
 0x304   :  { %1887 = vst [vmem:[#allocation2 + $0x58] sm:$0xff] %v1871_v56  ;;  %v2121_v56 = vld [vmem:[#allocation3 + $0x4f0] sm:$0xff] }
 0x305   :  { %v1846_v43 = vsel %vm1373_vm5, %v1840_v0, %v1841_v22  ;;  %v1826_v15 = vmax.f32 %v1804_v4, 0.0  ;;  %v1664_v34 = vadd.f32 %v2452_v14, %v4072_v31  ;;  %v2939_v0 = vpack.c.bf16 %v2120_v35, %v2119_v2  ;;  %v2259_v4 = vld [vmem:[%s4170_s1 + $0x7] ss:$0 sm:$0xff] }
 0x306   :  { %v1872_v60 = vmax.f32 %v1824_v29, %v1846_v43  ;;  %v2117_v29 = vld [vmem:[#allocation3 + $0x4d0] sm:$0xff] }
 0x307   :  { %v1842_v9 = vrot.slane %v1826_v15, 4  ;;  %v1809_v47 = vadd.f32 %v4077_v13, %v1664_v34  ;;  %v1901_v13 = vld [vmem:[#allocation2 + $0x8] ss:$16 sm:$0xc]  ;;  %v2936_v41 = vpack.c.bf16 %v2118_v18, %v2117_v29 }
 0x308   :  { %1888 = vst [vmem:[#allocation2 + $0x60] sm:$0xff] %v1872_v60  ;;  %v1895_v7 = vld [vmem:[#allocation2] ss:$16 sm:$0x30]  ;;  %v1902_v11 = vor.u32 %v1901_v13, %v1900_v63  ;;  %v2260_v34 = vld [vmem:[%s4170_s1 + $0x8] ss:$0 sm:$0xff] }
 0x309   :  { %v1845_v23 = vsel %vm1373_vm5, %v1841_v22, %v1842_v9  ;;  %v1827_v58 = vmax.f32 %v1809_v47, 0.0  ;;  %v1896_v36 = vor.u32 %v1895_v7, %v1894_v5  ;;  %v2942_v22 = vpack.c.bf16 %v2122_v55, %v2121_v56 }
 0x30a   :  { %v1873_v52 = vmax.f32 %v1825_v62, %v1845_v23 }
 0x30b   :  { %v1843_v48 = vrot.slane %v1827_v58, 4  ;;  %v1903_v10 = vld [vmem:[#allocation2 + $0x8] ss:$16 sm:$0x30] }
 0x30c   :  { %1889 = vst [vmem:[#allocation2 + $0x68] sm:$0xff] %v1873_v52  ;;  %v1904_v49 = vor.u32 %v1903_v10, %v1902_v11 }
 0x30d   :  { %v1844_v17 = vsel %vm1373_vm5, %v1842_v9, %v1843_v48  ;;  %v1859_v40 = vsel %vm1373_vm5, %v1843_v48, %v4085_v37  ;;  %v2030_v37 = vld [vmem:[#allocation3 + $0x478] sm:$0xff]  ;;  %vm2983_vm5 = vmmov 0  }
 0x30e   :  { %v1874_v31 = vmax.f32 %v1826_v15, %v1844_v17  ;;  %v1875_v16 = vmax.f32 %v1827_v58, %v1859_v40  ;;  %v2918_v53 = vpack.c.bf16 %v2030_v37, %v2029_v26  ;;  %2698 = vmatprep.mubr.msk.f32.mxu1 %vm2983_vm5, %v4228_v8 }
 0x310   :  { %1890 = vst [vmem:[#allocation2 + $0x70] sm:$0xff] %v1874_v31  ;;  %1891 = vst [vmem:[#allocation2 + $0x78] sm:$0xff] %v1875_v16  ;;  %2919 = vmatpush3.bf16.msra.mxu1 %v2918_v53 }
 0x317   :  { %v1905_v57 = vld [vmem:[#allocation2 + $0x8] ss:$16 sm:$0xc0]  ;;  %v1897_v61 = vld [vmem:[#allocation2] ss:$16 sm:$0xc0] }
 0x318   :  { %v1906_v30 = vor.u32 %v1905_v57, %v1904_v49  ;;  %v1898_v33 = vor.u32 %v1897_v61, %v1896_v36 }
 0x31a   :  { %2008 = vmatprep.mubr.f32.mxu0 %v1906_v30 }
 0x31b   :  { %2009 = vmatmul.mubr.f32.vlgmr.msra.gmra.mrb[48].mxu0 %v1898_v33 }
 0x31c   :  { %2733 = vmatprep.mubr.msk.f32.mxu0 %vm2983_vm5, %v4228_v8  ;;  %2922 = vmatpush3.bf16.msra.mxu0 %v2921_v38  ;;  %v2115_v8 = vld [vmem:[#allocation3 + $0x4c0] sm:$0xff] }
 0x31d   :  { %2923 = vmatprep.subr.bf16.mxu0 %v2982_v50  ;;  %v2933_v12 = vpack.c.bf16 %v2116_v51, %v2115_v8 }
 0x320   :  { %2925 = vmatpush3.bf16.msra.mxu0 %v2924_v28 }
 0x321   :  { %2926 = vmatprep.subr.bf16.mxu0 %v2982_v50 }
 0x324   :  { %2928 = vmatpush3.bf16.msra.mxu0 %v2927_v20 }
 0x325   :  { %2929 = vmatprep.subr.bf16.mxu0 %v2982_v50 }
 0x328   :  { %2931 = vmatpush3.bf16.msra.mxu0 %v2930_v59 }
 0x329   :  { %2932 = vmatprep.subr.bf16.mxu0 %v2982_v50 }
 0x32c   :  { %2934 = vmatpush3.bf16.msra.mxu0 %v2933_v12 }
 0x32d   :  { %2935 = vmatprep.subr.bf16.mxu0 %v2982_v50 }
 0x330   :  { %2937 = vmatpush3.bf16.msra.mxu0 %v2936_v41 }
 0x331   :  { %2938 = vmatprep.subr.bf16.mxu0 %v2982_v50 }
 0x334   :  { %2940 = vmatpush3.bf16.msra.mxu0 %v2939_v0 }
 0x335   :  { %2941 = vmatprep.subr.bf16.mxu0 %v2982_v50 }
 0x338   :  { %2943 = vmatpush3.bf16.msra.mxu0 %v2942_v22 }
 0x3ee   :  { %v2517_v46 = vpop.f32.mrb[48].mxu0 }
 0x3ef   :  { %v2518_v21 = vpop.f32.mrb[49].mxu0 }
 0x3f0   :  { %v2519_v62 = vadd.f32 %v2518_v21, %v2517_v46 }
 0x3f2   :  { %v2011_v27 = vadd.f32 %v2519_v62, %v2258_v44 }
 0x3f4   :  { %v2014_v39 = vmax.f32 %v2011_v27, 0.0 }
 0x3f6   :  { %2699 = vmatmul.mubr.f32.vlgmr.msra.gmra.mrb[48].mxu1 %v2014_v39 }
 0x4c9   :  { %v2102_v14 = vpop.f32.mrb[48].mxu1 }
 0x4ca   :  { %v2103_v50 = vadd.f32 %v2259_v4, %v2102_v14  ;;  %v2700_v43 = vpop.f32.mrb[49].mxu1 }
 0x4cc   :  { %v2106_v15 = vmax.f32 %v2103_v50, 0.0 }
 0x4ce   :  { %2734 = vmatmul.mubr.f32.vlgmr.msra.gmra.mrb[50].mxu0 %v2106_v15 }
 0x5a1   :  { %v2194_v60 = vpop.f32.mrb[50].mxu0 }
 0x5a2   :  { %v2195_v9 = vadd.f32 %v2260_v34, %v2194_v60  ;;  %v2735_v47 = vpop.f32.mrb[51].mxu0 }
 0x5a4   :  { %2198 = vst [vmem:[%s4172_s3] sm:$0xff] %v2195_v9 }
 0x5a5   :  { %2203 = vsyncpa [#allocation4], 1 }

</bundles_post_ra>
